<compile_context>
chip_gen: v5e
topology: v5e:2x2
jax: 0.10.0
libtpu: 0.0.40
codegen_flags: <defaults>
</compile_context>

<pallas_src>
import math
from functools import partial

import jax
import jax.numpy as jnp
from jax import lax
from jax.experimental import pallas as pl
from jax.experimental.pallas import tpu as pltpu

_NEG = -1e30  # finite "masked" value (robust vs -inf if a row were fully masked)


# ----------------------------------------------------------------------------
# Pallas kernel: one EpisodeMultiheadAttentionBlock forward for BB batch items
# ----------------------------------------------------------------------------
def _attn_block_kernel(key_ref, *rest, num_heads, head_dim, query_length,
                       use_residual, has_kpm):
    if has_kpm:
        (kpm_ref, wq_ref, bq_ref, wkv_ref, bkv_ref, wo_ref, bo_ref,
         out_ref, attnw_ref, ctx_ref) = rest
    else:
        kpm_ref = None
        (wq_ref, bq_ref, wkv_ref, bkv_ref, wo_ref, bo_ref,
         out_ref, attnw_ref, ctx_ref) = rest

    BB, L, E = key_ref.shape
    Q = query_length
    H = num_heads
    hd = head_dim

    key_f32 = key_ref[...]                                   # (BB, L, E) f32
    key_bf = key_f32.astype(jnp.bfloat16)

    # K/V projection on all rows: (BB*L, E) @ (E, 2E), f32 accumulate.
    x = key_bf.reshape(BB * L, E)
    kv = jnp.dot(x, wkv_ref[...], preferred_element_type=jnp.float32)
    kv_bf = (kv + bkv_ref[...]).astype(jnp.bfloat16)         # (BB*L, 2E)

    # Q projection only on the last Q rows per item; scale folded into Wq/bq.
    q_in = key_bf[:, L - Q:, :].reshape(BB * Q, E)
    q = jnp.dot(q_in, wq_ref[...], preferred_element_type=jnp.float32)
    q_bf = (q + bq_ref[...]).astype(jnp.bfloat16)            # (BB*Q, E)

    # Head-invariant causal structure, built in-kernel (no HBM mask traffic).
    rows = lax.broadcasted_iota(jnp.int32, (Q, L), 0)
    cols = lax.broadcasted_iota(jnp.int32, (Q, L), 1)
    causal = cols > rows + (L - Q)                           # triu(diag=1)[-Q:]
    diag = cols == rows + (L - Q)

    if has_kpm:
        kpm = kpm_ref[...]                                   # (BB, 1, L) f32 0/1

    inv_h = 1.0 / H
    # Static unroll over batch items / heads (BB is capped in the wrapper so
    # the unroll stays small and live ranges stay within the vreg file).
    for b in range(BB):
        if has_kpm:
            pad = kpm[b, 0, :] > 0.5                         # (L,)
            # torch: (causal OR padding) AND NOT eye -> diagonal stays visible
            masked = jnp.logical_and(jnp.logical_or(causal, pad[None, :]),
                                     jnp.logical_not(diag))
        else:
            masked = causal
        neg = jnp.where(masked, _NEG, 0.0).astype(jnp.float32)

        qb = q_bf[b * Q:(b + 1) * Q, :]                      # (Q, E) bf16
        kb = kv_bf[b * L:(b + 1) * L, :E]                    # (L, E) bf16
        vb = kv_bf[b * L:(b + 1) * L, E:]                    # (L, E) bf16

        probs_sum = jnp.zeros((Q, L), jnp.float32)
        for h in range(H):
            lo = h * hd
            qh = qb[:, lo:lo + hd]
            kh = kb[:, lo:lo + hd]
            vh = vb[:, lo:lo + hd]
            s = lax.dot_general(qh, kh, (((1,), (1,)), ((), ())),
                                preferred_element_type=jnp.float32)   # (Q, L)
            s = s + neg
            m = jnp.max(s, axis=-1, keepdims=True)
            e = jnp.exp(s - m)                               # f32 softmax math
            p = e / jnp.sum(e, axis=-1, keepdims=True)       # exact probs
            probs_sum = probs_sum + p
            oh = jnp.dot(p.astype(jnp.bfloat16), vh,
                         preferred_element_type=jnp.float32)  # (Q, hd)
            # Write straight into the context scratch (no concatenates).
            ctx_ref[b * Q:(b + 1) * Q, lo:lo + hd] = oh
        attnw_ref[b] = probs_sum * inv_h                     # head-averaged

    # Fused output projection: one (BB*Q, E) @ (E, E) bf16 matmul (K = E).
    ctx = ctx_ref[...].astype(jnp.bfloat16)
    o = jnp.dot(ctx, wo_ref[...], preferred_element_type=jnp.float32)
    o = (o + bo_ref[...]).reshape(BB, Q, E)
    if use_residual:
        o = o + key_f32[:, L - Q:, :]                        # exact f32 residual
    out_ref[...] = o


# ----------------------------------------------------------------------------
# Block-batch / VMEM sizing heuristics
# ----------------------------------------------------------------------------
def _physical_vmem_bytes():
    try:
        return int(pltpu.get_tpu_info().vmem_capacity_bytes)
    except Exception:
        return 64 * 1024 * 1024  # conservative (v7x-sized) fallback


def _vmem_estimate(bb, L, E, Q, has_kpm):
    f32, bf16 = 4, 2
    # Pipelined (double-buffered) I/O blocks.
    io = bb * L * E * f32 + bb * Q * E * f32 + bb * Q * L * f32
    if has_kpm:
        io += bb * L * f32
    io *= 2
    # Weights / biases (double-buffered by the pipeline even though constant).
    w = (E * E + E * 2 * E + E * E) * bf16 * 2 + (4 * E) * f32 * 2
    # In-kernel intermediates + ctx scratch (rough upper bound).
    inter = (bb * L * 2 * E * (f32 + bf16) + bb * Q * E * (f32 + bf16)
             + bb * L * E * bf16 + bb * Q * E * f32)
    return io + w + inter


def _choose_block_batch(B, L, E, Q, has_kpm, budget_bytes):
    """Largest divisor of B that fits the VMEM budget, with the static unroll
    capped (bb <= 8, bb*L <= 1024 rows) so live ranges stay bounded.
    Single-TC chips (v5e/v6e) want the fattest bb; v7x additionally prefers an
    even grid, which the 'parallel' axis gives whenever B // bb >= 2."""
    best = 1
    for d in range(1, B + 1):
        if B % d:
            continue
        if d > 8 or d * L > 1024:
            continue
        if _vmem_estimate(d, L, E, Q, has_kpm) > budget_bytes:
            continue
        best = d
    return best


# ----------------------------------------------------------------------------
# One EpisodeMultiheadAttentionBlock forward via pallas_call
# ----------------------------------------------------------------------------
def attention_block(packed, key_arr, query_length, key_padding_mask,
                    num_heads, use_residual):
    B, L, E = key_arr.shape
    hd = E // num_heads
    Q = query_length
    has_kpm = key_padding_mask is not None

    key_f32 = key_arr.astype(jnp.float32)

    if has_kpm:
        kl = key_padding_mask.shape[1]
        assert kl <= L
        if kl < L:
            key_padding_mask = jnp.concatenate(
                [jnp.tile(key_padding_mask[:, :1], (1, L - kl)),
                 key_padding_mask], axis=1)
        kpm = key_padding_mask.astype(jnp.float32).reshape(B, 1, L)

    phys = _physical_vmem_bytes()
    budget = max(8 << 20, phys // 3)
    bb = _choose_block_batch(B, L, E, Q, has_kpm, budget)
    grid = (B // bb,)

    est = _vmem_estimate(bb, L, E, Q, has_kpm)
    vmem_limit = int(min(64 << 20, phys - (8 << 20), max(32 << 20, 2 * est)))

    kernel = partial(_attn_block_kernel, num_heads=num_heads, head_dim=hd,
                     query_length=Q, use_residual=use_residual,
                     has_kpm=has_kpm)

    in_specs = [pl.BlockSpec((bb, L, E), lambda i: (i, 0, 0))]    # key (f32)
    operands = [key_f32]
    if has_kpm:
        in_specs.append(pl.BlockSpec((bb, 1, L), lambda i: (i, 0, 0)))
        operands.append(kpm)
    in_specs += [
        pl.BlockSpec((E, E), lambda i: (0, 0)),          # Wq^T  (bf16, scaled)
        pl.BlockSpec((1, E), lambda i: (0, 0)),          # bq    (f32, scaled)
        pl.BlockSpec((E, 2 * E), lambda i: (0, 0)),      # Wkv^T (bf16)
        pl.BlockSpec((1, 2 * E), lambda i: (0, 0)),      # bkv   (f32)
        pl.BlockSpec((E, E), lambda i: (0, 0)),          # Wo^T  (bf16)
        pl.BlockSpec((1, E), lambda i: (0, 0)),          # bo    (f32)
    ]
    operands += [packed["wq"], packed["bq"], packed["wkv"], packed["bkv"],
                 packed["wo"], packed["bo"]]

    out, attnw = pl.pallas_call(
        kernel,
        grid=grid,
        in_specs=in_specs,
        out_specs=[
            pl.BlockSpec((bb, Q, E), lambda i: (i, 0, 0)),
            pl.BlockSpec((bb, Q, L), lambda i: (i, 0, 0)),
        ],
        out_shape=[
            jax.ShapeDtypeStruct((B, Q, E), jnp.float32),
            jax.ShapeDtypeStruct((B, Q, L), jnp.float32),
        ],
        scratch_shapes=[pltpu.VMEM((bb * Q, E), jnp.float32)],   # ctx slab
        compiler_params=pltpu.CompilerParams(
            dimension_semantics=("parallel",),
            vmem_limit_bytes=vmem_limit),
    )(*operands)
    return out, attnw


# ----------------------------------------------------------------------------
# EpisodeMultiheadAttention (plain-JAX glue around the Pallas block)
# ----------------------------------------------------------------------------
def _pack_params(in_w, in_b, out_w, out_b, num_heads):
    E = out_w.shape[0]
    hd = E // num_heads
    scale = 1.0 / math.sqrt(hd)
    return dict(
        wq=(in_w[:E] * scale).T.astype(jnp.bfloat16),             # (E, E)
        bq=(in_b[:E] * scale).reshape(1, E).astype(jnp.float32),
        wkv=in_w[E:].T.astype(jnp.bfloat16),                      # (E, 2E)
        bkv=in_b[E:].reshape(1, 2 * E).astype(jnp.float32),
        wo=out_w.T.astype(jnp.bfloat16),                          # (E, E)
        bo=out_b.reshape(1, E).astype(jnp.float32),
    )


class EpisodeMultiheadAttention:
    def __init__(self, embed_dim, num_heads, num_layers=2, use_residual=True,
                 *, rng):
        assert embed_dim % num_heads == 0
        self.embed_dim = embed_dim
        self.num_heads = num_heads
        self.num_layers = num_layers
        self.use_residual = use_residual
        self.params = []    # raw torch-layout params (for the reference check)
        self.packed = []    # pre-packed kernel weights (once, not per call)
        for _ in range(num_layers):
            rng, k1, k2 = jax.random.split(rng, 3)
            # xavier_uniform for in_proj_weight, zeros biases (torch default)
            lim_in = math.sqrt(6.0 / (3 * embed_dim + embed_dim))
            in_w = jax.random.uniform(k1, (3 * embed_dim, embed_dim),
                                      jnp.float32, -lim_in, lim_in)
            lim_out = math.sqrt(1.0 / embed_dim)
            out_w = jax.random.uniform(k2, (embed_dim, embed_dim),
                                       jnp.float32, -lim_out, lim_out)
            in_b = jnp.zeros((3 * embed_dim,), jnp.float32)
            out_b = jnp.zeros((embed_dim,), jnp.float32)
            self.params.append(dict(in_w=in_w, in_b=in_b,
                                    out_w=out_w, out_b=out_b))
            self.packed.append(_pack_params(in_w, in_b, out_w, out_b,
                                            num_heads))

    def _block(self, layer_idx, key_arr, query_length, key_padding_mask):
        return attention_block(self.packed[layer_idx], key_arr, query_length,
                               key_padding_mask, self.num_heads,
                               self.use_residual)

    def __call__(self, key, query_length=1, hidden_state=None,
                 is_prev_hidden_state=False, key_padding_mask=None):
        B, key_length, _ = key.shape
        assert query_length <= key_length
        next_hidden_state_list = []
        attn_weights_list = []

        if hidden_state is None:
            _k = key
            for i in range(self.num_layers - 1):
                output, attn_weight = self._block(i, _k, key_length,
                                                  key_padding_mask)
                _k = output
                _q = _k[:, -query_length:]
                next_hidden_state_list.append(_q)
                attn_weights_list.append(attn_weight[:, -query_length:])
            output, attn_weight = self._block(self.num_layers - 1, _k,
                                              query_length, key_padding_mask)
            attn_weights_list.append(attn_weight)
            _q = output
        elif not is_prev_hidden_state:
            output, attn_weight = self._block(0, key, query_length,
                                              key_padding_mask)
            attn_weights_list.append(attn_weight)
            if self.num_layers > 1:
                hidden_state_list = jnp.split(hidden_state,
                                              self.num_layers - 1, axis=-1)
            for i in range(1, self.num_layers):
                next_hidden_state_list.append(output)
                _k = jnp.concatenate([hidden_state_list[i - 1], output], axis=1)
                output, attn_weight = self._block(i, _k, query_length,
                                                  key_padding_mask)
                attn_weights_list.append(attn_weight)
            _q = output
        else:
            output, attn_weight = self._block(0, key, key_length,
                                              key_padding_mask)
            next_hidden_state_list.append(output[:, -query_length:])
            attn_weights_list.append(attn_weight[:, -query_length:])
            if self.num_layers > 1:
                hidden_state_list = jnp.split(hidden_state,
                                              self.num_layers - 1, axis=-1)
            for i in range(1, self.num_layers - 1):
                _k = output[:, -key_length:]
                _k = jnp.concatenate([hidden_state_list[i - 1], _k], axis=1)
                output, attn_weight = self._block(i, _k, key_length,
                                                  key_padding_mask)
                next_hidden_state_list.append(output[:, -query_length:])
                attn_weights_list.append(attn_weight[:, -query_length:])
            if self.num_layers > 1:
                _k = output[:, -key_length:]
                _k = jnp.concatenate([hidden_state_list[-1], _k], axis=1)
                output, attn_weight = self._block(self.num_layers - 1, _k,
                                                  query_length,
                                                  key_padding_mask)
                attn_weights_list.append(attn_weight)
            _q = output

        if self.num_layers > 1:
            return (_q, jnp.concatenate(next_hidden_state_list, axis=-1),
                    attn_weights_list)
        # TODO(synk): torch returns torch.empty(...) here; zeros as stand-in.
        return _q, jnp.zeros((B, query_length, 1), jnp.float32), attn_weights_list


# ----------------------------------------------------------------------------
# Pure-JAX f32 reference of one block (torch MHA semantics) for spot-checks
# ----------------------------------------------------------------------------
def _ref_block(params, key_arr, query_length, key_padding_mask, num_heads,
               use_residual):
    B, L, E = key_arr.shape
    hd = E // num_heads
    Q = query_length
    triu = jnp.triu(jnp.ones((L, L), dtype=bool), k=1)
    attn_mask = triu[-Q:]
    if key_padding_mask is not None:
        kl = key_padding_mask.shape[1]
        if kl < L:
            key_padding_mask = jnp.concatenate(
                [jnp.tile(key_padding_mask[:, :1], (1, L - kl)),
                 key_padding_mask], axis=1)
        am = jnp.broadcast_to(attn_mask[None], (B, Q, L))
        am = jnp.logical_or(am, key_padding_mask[:, None, :])
        eye = jnp.logical_not(jnp.eye(L, dtype=bool))[-Q:]
        am = jnp.logical_and(am, eye[None])
        mask = am[:, None]                                   # (B, 1, Q, L)
    else:
        mask = attn_mask[None, None]
    add = jnp.where(mask, _NEG, 0.0)

    q_in = key_arr[:, L - Q:]
    q = q_in @ params["in_w"][:E].T + params["in_b"][:E]
    k = key_arr @ params["in_w"][E:2 * E].T + params["in_b"][E:2 * E]
    v = key_arr @ params["in_w"][2 * E:].T + params["in_b"][2 * E:]
    q = q.reshape(B, Q, num_heads, hd).transpose(0, 2, 1, 3)
    k = k.reshape(B, L, num_heads, hd).transpose(0, 2, 1, 3)
    v = v.reshape(B, L, num_heads, hd).transpose(0, 2, 1, 3)
    scores = jnp.einsum("bhqd,bhkd->bhqk", q, k) / math.sqrt(hd) + add
    p = jax.nn.softmax(scores, axis=-1)
    o = jnp.einsum("bhqk,bhkd->bhqd", p, v).transpose(0, 2, 1, 3)
    o = o.reshape(B, Q, E) @ params["out_w"].T + params["out_b"]
    if use_residual:
        o = o + q_in
    return o, p.mean(axis=1)


if __name__ == "__main__":
    B, L, E, H, NL, Q = 2, 8, 32, 4, 2, 2
    rng = jax.random.PRNGKey(0)
    rng, k_inp, k_mod = jax.random.split(rng, 3)

    model = EpisodeMultiheadAttention(E, H, num_layers=NL, use_residual=True,
                                      rng=k_mod)
    key = jax.random.normal(k_inp, (B, L, E), jnp.float32)

    # main forward (hidden_state=None branch, no padding)
    q_out, next_hidden, attn_list = model(key, query_length=Q)
    jax.block_until_ready((q_out, next_hidden, attn_list))
    assert q_out.shape == (B, Q, E)
    assert next_hidden.shape == (B, Q, E * (NL - 1))
    assert attn_list[0].shape == (B, Q, L) and attn_list[-1].shape == (B, Q, L)

    # forward with a key_padding_mask (exercises in-kernel padding + diag-unmask)
    kpm = jnp.zeros((B, L), dtype=bool).at[0, :3].set(True)
    q_out_p, next_hidden_p, _ = model(key, query_length=Q, key_padding_mask=kpm)
    jax.block_until_ready((q_out_p, next_hidden_p))
    assert bool(jnp.all(jnp.isfinite(q_out_p)))

    # spot-check the Pallas block against the pure-JAX f32 reference
    for test_kpm in (None, kpm):
        pk_out, pk_w = attention_block(model.packed[0], key, L, test_kpm, H, True)
        rf_out, rf_w = _ref_block(model.params[0], key, L, test_kpm, H, True)
        jax.block_until_ready((pk_out, pk_w))
        assert jnp.allclose(pk_out, rf_out, atol=3e-2, rtol=3e-2), \
            float(jnp.max(jnp.abs(pk_out - rf_out)))
        assert jnp.allclose(pk_w, rf_w, atol=1e-2, rtol=1e-2), \
            float(jnp.max(jnp.abs(pk_w - rf_w)))

    print("KERNEL_OK")
</pallas_src>

<mosaic_0001>
module attributes {stable_mosaic.version = 11 : i64} {
  func.func @_attn_block_kernel(%arg0: i32, %arg1: memref<2x8x32xf32, #tpu.memory_space<vmem>>, %arg2: memref<32x32xbf16, #tpu.memory_space<vmem>>, %arg3: memref<1x32xf32, #tpu.memory_space<vmem>>, %arg4: memref<32x64xbf16, #tpu.memory_space<vmem>>, %arg5: memref<1x64xf32, #tpu.memory_space<vmem>>, %arg6: memref<32x32xbf16, #tpu.memory_space<vmem>>, %arg7: memref<1x32xf32, #tpu.memory_space<vmem>>, %arg8: memref<2x8x32xf32, #tpu.memory_space<vmem>>, %arg9: memref<2x8x8xf32, #tpu.memory_space<vmem>>, %arg10: memref<16x32xf32, #tpu.memory_space<vmem>>) attributes {dimension_semantics = [#tpu.dimension_semantics<parallel>], iteration_bounds = array<i64: 1>, scalar_prefetch = 0 : i64, scratch_operands = 1 : i64, tpu.core_type = #tpu.core_type<tc>, window_params = [{transform_indices = @transform_0, window_bounds = array<i64: 2, 8, 32>}, {pipeline_mode = #tpu.pipeline_mode<synchronous>, transform_indices = @transform_1, window_bounds = array<i64: 32, 32>}, {pipeline_mode = #tpu.pipeline_mode<synchronous>, transform_indices = @transform_2, window_bounds = array<i64: 1, 32>}, {pipeline_mode = #tpu.pipeline_mode<synchronous>, transform_indices = @transform_3, window_bounds = array<i64: 32, 64>}, {pipeline_mode = #tpu.pipeline_mode<synchronous>, transform_indices = @transform_4, window_bounds = array<i64: 1, 64>}, {pipeline_mode = #tpu.pipeline_mode<synchronous>, transform_indices = @transform_5, window_bounds = array<i64: 32, 32>}, {pipeline_mode = #tpu.pipeline_mode<synchronous>, transform_indices = @transform_6, window_bounds = array<i64: 1, 32>}, {transform_indices = @transform_7, window_bounds = array<i64: 2, 8, 32>}, {transform_indices = @transform_8, window_bounds = array<i64: 2, 8, 8>}]} {
    %c0 = arith.constant 0 : index
    %c0_0 = arith.constant 0 : index
    %c0_1 = arith.constant 0 : index
    %0 = vector.load %arg1[%c0, %c0_0, %c0_1] : memref<2x8x32xf32, #tpu.memory_space<vmem>>, vector<2x8x32xf32>
    %1 = arith.truncf %0 : vector<2x8x32xf32> to vector<2x8x32xbf16>
    %2 = vector.shape_cast %1 : vector<2x8x32xbf16> to vector<16x32xbf16>
    %c0_2 = arith.constant 0 : index
    %c0_3 = arith.constant 0 : index
    %3 = vector.load %arg4[%c0_2, %c0_3] : memref<32x64xbf16, #tpu.memory_space<vmem>>, vector<32x64xbf16>
    %cst = arith.constant dense<0.000000e+00> : vector<16x64xf32>
    %4 = tpu.matmul %2, %3, %cst {dimension_numbers = #tpu.dot_dimension_numbers<[1], [0], [0], [1], [0, 0, 1, 1], [], []>} : vector<16x32xbf16>, vector<32x64xbf16>, vector<16x64xf32> -> vector<16x64xf32>
    %c0_4 = arith.constant 0 : index
    %c0_5 = arith.constant 0 : index
    %5 = vector.load %arg5[%c0_4, %c0_5] : memref<1x64xf32, #tpu.memory_space<vmem>>, vector<1x64xf32>
    %6 = vector.broadcast %5 : vector<1x64xf32> to vector<16x64xf32>
    %7 = arith.addf %4, %6 : vector<16x64xf32>
    %8 = arith.truncf %7 : vector<16x64xf32> to vector<16x64xbf16>
    %9 = vector.shape_cast %1 : vector<2x8x32xbf16> to vector<16x32xbf16>
    %c0_6 = arith.constant 0 : index
    %c0_7 = arith.constant 0 : index
    %10 = vector.load %arg2[%c0_6, %c0_7] : memref<32x32xbf16, #tpu.memory_space<vmem>>, vector<32x32xbf16>
    %cst_8 = arith.constant dense<0.000000e+00> : vector<16x32xf32>
    %11 = tpu.matmul %9, %10, %cst_8 {dimension_numbers = #tpu.dot_dimension_numbers<[1], [0], [0], [1], [0, 0, 1, 1], [], []>} : vector<16x32xbf16>, vector<32x32xbf16>, vector<16x32xf32> -> vector<16x32xf32>
    %c0_9 = arith.constant 0 : index
    %c0_10 = arith.constant 0 : index
    %12 = vector.load %arg3[%c0_9, %c0_10] : memref<1x32xf32, #tpu.memory_space<vmem>>, vector<1x32xf32>
    %13 = vector.broadcast %12 : vector<1x32xf32> to vector<16x32xf32>
    %14 = arith.addf %11, %13 : vector<16x32xf32>
    %15 = arith.truncf %14 : vector<16x32xf32> to vector<16x32xbf16>
    %16 = tpu.iota {dimensions = array<i32: 0>} : vector<8x8xi32>
    %17 = tpu.iota {dimensions = array<i32: 1>} : vector<8x8xi32>
    %c0_i32 = arith.constant 0 : i32
    %18 = vector.broadcast %c0_i32 : i32 to vector<8x8xi32>
    %19 = arith.addi %16, %18 : vector<8x8xi32>
    %20 = arith.cmpi sgt, %17, %19 : vector<8x8xi32>
    %cst_11 = arith.constant -1.000000e+30 : f32
    %cst_12 = arith.constant 0.000000e+00 : f32
    %21 = vector.broadcast %cst_11 : f32 to vector<8x8xf32>
    %22 = vector.broadcast %cst_12 : f32 to vector<8x8xf32>
    %23 = arith.select %20, %21, %22 : vector<8x8xi1>, vector<8x8xf32>
    %24 = vector.extract_strided_slice %15 {offsets = [0, 0], sizes = [8, 32], strides = [1, 1]} : vector<16x32xbf16> to vector<8x32xbf16>
    %25 = vector.extract_strided_slice %8 {offsets = [0, 0], sizes = [8, 32], strides = [1, 1]} : vector<16x64xbf16> to vector<8x32xbf16>
    %26 = vector.extract_strided_slice %8 {offsets = [0, 32], sizes = [8, 32], strides = [1, 1]} : vector<16x64xbf16> to vector<8x32xbf16>
    %cst_13 = arith.constant 0.000000e+00 : f32
    %27 = vector.broadcast %cst_13 : f32 to vector<8x8xf32>
    %28 = vector.extract_strided_slice %24 {offsets = [0, 0], sizes = [8, 8], strides = [1, 1]} : vector<8x32xbf16> to vector<8x8xbf16>
    %29 = vector.extract_strided_slice %25 {offsets = [0, 0], sizes = [8, 8], strides = [1, 1]} : vector<8x32xbf16> to vector<8x8xbf16>
    %30 = vector.extract_strided_slice %26 {offsets = [0, 0], sizes = [8, 8], strides = [1, 1]} : vector<8x32xbf16> to vector<8x8xbf16>
    %cst_14 = arith.constant dense<0.000000e+00> : vector<8x8xf32>
    %31 = tpu.matmul %28, %29, %cst_14 {dimension_numbers = #tpu.dot_dimension_numbers<[1], [1], [0], [0], [0, 0, 1, 0], [], []>} : vector<8x8xbf16>, vector<8x8xbf16>, vector<8x8xf32> -> vector<8x8xf32>
    %32 = arith.addf %31, %23 : vector<8x8xf32>
    %cst_15 = arith.constant dense<0xFF800000> : vector<8xf32>
    %33 = vector.multi_reduction <maximumf>, %32, %cst_15 [1] : vector<8x8xf32> to vector<8xf32>
    %34 = vector.shape_cast %33 : vector<8xf32> to vector<8x1xf32>
    %35 = vector.broadcast %34 : vector<8x1xf32> to vector<8x8xf32>
    %36 = arith.subf %32, %35 : vector<8x8xf32>
    %37 = math.exp %36 : vector<8x8xf32>
    %cst_16 = arith.constant dense<0.000000e+00> : vector<8xf32>
    %38 = vector.multi_reduction <add>, %37, %cst_16 [1] : vector<8x8xf32> to vector<8xf32>
    %39 = vector.shape_cast %38 : vector<8xf32> to vector<8x1xf32>
    %40 = vector.broadcast %39 : vector<8x1xf32> to vector<8x8xf32>
    %41 = arith.divf %37, %40 : vector<8x8xf32>
    %42 = arith.addf %27, %41 : vector<8x8xf32>
    %43 = arith.truncf %41 : vector<8x8xf32> to vector<8x8xbf16>
    %cst_17 = arith.constant dense<0.000000e+00> : vector<8x8xf32>
    %44 = tpu.matmul %43, %30, %cst_17 {dimension_numbers = #tpu.dot_dimension_numbers<[1], [0], [0], [1], [0, 0, 1, 1], [], []>} : vector<8x8xbf16>, vector<8x8xbf16>, vector<8x8xf32> -> vector<8x8xf32>
    %c0_18 = arith.constant 0 : index
    %c0_19 = arith.constant 0 : index
    %45 = vector.load %arg10[%c0_18, %c0_19] : memref<16x32xf32, #tpu.memory_space<vmem>>, vector<8x8xf32>
    tpu.vector_store %arg10[%c0_18, %c0_19], %44 {strides = array<i32>} : memref<16x32xf32, #tpu.memory_space<vmem>>, vector<8x8xf32>,
    %46 = vector.extract_strided_slice %24 {offsets = [0, 8], sizes = [8, 8], strides = [1, 1]} : vector<8x32xbf16> to vector<8x8xbf16>
    %47 = vector.extract_strided_slice %25 {offsets = [0, 8], sizes = [8, 8], strides = [1, 1]} : vector<8x32xbf16> to vector<8x8xbf16>
    %48 = vector.extract_strided_slice %26 {offsets = [0, 8], sizes = [8, 8], strides = [1, 1]} : vector<8x32xbf16> to vector<8x8xbf16>
    %cst_20 = arith.constant dense<0.000000e+00> : vector<8x8xf32>
    %49 = tpu.matmul %46, %47, %cst_20 {dimension_numbers = #tpu.dot_dimension_numbers<[1], [1], [0], [0], [0, 0, 1, 0], [], []>} : vector<8x8xbf16>, vector<8x8xbf16>, vector<8x8xf32> -> vector<8x8xf32>
    %50 = arith.addf %49, %23 : vector<8x8xf32>
    %cst_21 = arith.constant dense<0xFF800000> : vector<8xf32>
    %51 = vector.multi_reduction <maximumf>, %50, %cst_21 [1] : vector<8x8xf32> to vector<8xf32>
    %52 = vector.shape_cast %51 : vector<8xf32> to vector<8x1xf32>
    %53 = vector.broadcast %52 : vector<8x1xf32> to vector<8x8xf32>
    %54 = arith.subf %50, %53 : vector<8x8xf32>
    %55 = math.exp %54 : vector<8x8xf32>
    %cst_22 = arith.constant dense<0.000000e+00> : vector<8xf32>
    %56 = vector.multi_reduction <add>, %55, %cst_22 [1] : vector<8x8xf32> to vector<8xf32>
    %57 = vector.shape_cast %56 : vector<8xf32> to vector<8x1xf32>
    %58 = vector.broadcast %57 : vector<8x1xf32> to vector<8x8xf32>
    %59 = arith.divf %55, %58 : vector<8x8xf32>
    %60 = arith.addf %42, %59 : vector<8x8xf32>
    %61 = arith.truncf %59 : vector<8x8xf32> to vector<8x8xbf16>
    %cst_23 = arith.constant dense<0.000000e+00> : vector<8x8xf32>
    %62 = tpu.matmul %61, %48, %cst_23 {dimension_numbers = #tpu.dot_dimension_numbers<[1], [0], [0], [1], [0, 0, 1, 1], [], []>} : vector<8x8xbf16>, vector<8x8xbf16>, vector<8x8xf32> -> vector<8x8xf32>
    %c0_24 = arith.constant 0 : index
    %c8 = arith.constant 8 : index
    %63 = vector.load %arg10[%c0_24, %c8] : memref<16x32xf32, #tpu.memory_space<vmem>>, vector<8x8xf32>
    tpu.vector_store %arg10[%c0_24, %c8], %62 {strides = array<i32>} : memref<16x32xf32, #tpu.memory_space<vmem>>, vector<8x8xf32>,
    %64 = vector.extract_strided_slice %24 {offsets = [0, 16], sizes = [8, 8], strides = [1, 1]} : vector<8x32xbf16> to vector<8x8xbf16>
    %65 = vector.extract_strided_slice %25 {offsets = [0, 16], sizes = [8, 8], strides = [1, 1]} : vector<8x32xbf16> to vector<8x8xbf16>
    %66 = vector.extract_strided_slice %26 {offsets = [0, 16], sizes = [8, 8], strides = [1, 1]} : vector<8x32xbf16> to vector<8x8xbf16>
    %cst_25 = arith.constant dense<0.000000e+00> : vector<8x8xf32>
    %67 = tpu.matmul %64, %65, %cst_25 {dimension_numbers = #tpu.dot_dimension_numbers<[1], [1], [0], [0], [0, 0, 1, 0], [], []>} : vector<8x8xbf16>, vector<8x8xbf16>, vector<8x8xf32> -> vector<8x8xf32>
    %68 = arith.addf %67, %23 : vector<8x8xf32>
    %cst_26 = arith.constant dense<0xFF800000> : vector<8xf32>
    %69 = vector.multi_reduction <maximumf>, %68, %cst_26 [1] : vector<8x8xf32> to vector<8xf32>
    %70 = vector.shape_cast %69 : vector<8xf32> to vector<8x1xf32>
    %71 = vector.broadcast %70 : vector<8x1xf32> to vector<8x8xf32>
    %72 = arith.subf %68, %71 : vector<8x8xf32>
    %73 = math.exp %72 : vector<8x8xf32>
    %cst_27 = arith.constant dense<0.000000e+00> : vector<8xf32>
    %74 = vector.multi_reduction <add>, %73, %cst_27 [1] : vector<8x8xf32> to vector<8xf32>
    %75 = vector.shape_cast %74 : vector<8xf32> to vector<8x1xf32>
    %76 = vector.broadcast %75 : vector<8x1xf32> to vector<8x8xf32>
    %77 = arith.divf %73, %76 : vector<8x8xf32>
    %78 = arith.addf %60, %77 : vector<8x8xf32>
    %79 = arith.truncf %77 : vector<8x8xf32> to vector<8x8xbf16>
    %cst_28 = arith.constant dense<0.000000e+00> : vector<8x8xf32>
    %80 = tpu.matmul %79, %66, %cst_28 {dimension_numbers = #tpu.dot_dimension_numbers<[1], [0], [0], [1], [0, 0, 1, 1], [], []>} : vector<8x8xbf16>, vector<8x8xbf16>, vector<8x8xf32> -> vector<8x8xf32>
    %c0_29 = arith.constant 0 : index
    %c16 = arith.constant 16 : index
    %81 = vector.load %arg10[%c0_29, %c16] : memref<16x32xf32, #tpu.memory_space<vmem>>, vector<8x8xf32>
    tpu.vector_store %arg10[%c0_29, %c16], %80 {strides = array<i32>} : memref<16x32xf32, #tpu.memory_space<vmem>>, vector<8x8xf32>,
    %82 = vector.extract_strided_slice %24 {offsets = [0, 24], sizes = [8, 8], strides = [1, 1]} : vector<8x32xbf16> to vector<8x8xbf16>
    %83 = vector.extract_strided_slice %25 {offsets = [0, 24], sizes = [8, 8], strides = [1, 1]} : vector<8x32xbf16> to vector<8x8xbf16>
    %84 = vector.extract_strided_slice %26 {offsets = [0, 24], sizes = [8, 8], strides = [1, 1]} : vector<8x32xbf16> to vector<8x8xbf16>
    %cst_30 = arith.constant dense<0.000000e+00> : vector<8x8xf32>
    %85 = tpu.matmul %82, %83, %cst_30 {dimension_numbers = #tpu.dot_dimension_numbers<[1], [1], [0], [0], [0, 0, 1, 0], [], []>} : vector<8x8xbf16>, vector<8x8xbf16>, vector<8x8xf32> -> vector<8x8xf32>
    %86 = arith.addf %85, %23 : vector<8x8xf32>
    %cst_31 = arith.constant dense<0xFF800000> : vector<8xf32>
    %87 = vector.multi_reduction <maximumf>, %86, %cst_31 [1] : vector<8x8xf32> to vector<8xf32>
    %88 = vector.shape_cast %87 : vector<8xf32> to vector<8x1xf32>
    %89 = vector.broadcast %88 : vector<8x1xf32> to vector<8x8xf32>
    %90 = arith.subf %86, %89 : vector<8x8xf32>
    %91 = math.exp %90 : vector<8x8xf32>
    %cst_32 = arith.constant dense<0.000000e+00> : vector<8xf32>
    %92 = vector.multi_reduction <add>, %91, %cst_32 [1] : vector<8x8xf32> to vector<8xf32>
    %93 = vector.shape_cast %92 : vector<8xf32> to vector<8x1xf32>
    %94 = vector.broadcast %93 : vector<8x1xf32> to vector<8x8xf32>
    %95 = arith.divf %91, %94 : vector<8x8xf32>
    %96 = arith.addf %78, %95 : vector<8x8xf32>
    %97 = arith.truncf %95 : vector<8x8xf32> to vector<8x8xbf16>
    %cst_33 = arith.constant dense<0.000000e+00> : vector<8x8xf32>
    %98 = tpu.matmul %97, %84, %cst_33 {dimension_numbers = #tpu.dot_dimension_numbers<[1], [0], [0], [1], [0, 0, 1, 1], [], []>} : vector<8x8xbf16>, vector<8x8xbf16>, vector<8x8xf32> -> vector<8x8xf32>
    %c0_34 = arith.constant 0 : index
    %c24 = arith.constant 24 : index
    %99 = vector.load %arg10[%c0_34, %c24] : memref<16x32xf32, #tpu.memory_space<vmem>>, vector<8x8xf32>
    tpu.vector_store %arg10[%c0_34, %c24], %98 {strides = array<i32>} : memref<16x32xf32, #tpu.memory_space<vmem>>, vector<8x8xf32>,
    %cst_35 = arith.constant 2.500000e-01 : f32
    %100 = vector.broadcast %cst_35 : f32 to vector<8x8xf32>
    %101 = arith.mulf %96, %100 : vector<8x8xf32>
    %c0_36 = arith.constant 0 : index
    %c0_37 = arith.constant 0 : index
    %c0_38 = arith.constant 0 : index
    %102 = vector.load %arg9[%c0_36, %c0_37, %c0_38] : memref<2x8x8xf32, #tpu.memory_space<vmem>>, vector<1x8x8xf32>
    %103 = vector.shape_cast %102 : vector<1x8x8xf32> to vector<8x8xf32>
    %104 = vector.shape_cast %101 : vector<8x8xf32> to vector<1x8x8xf32>
    tpu.vector_store %arg9[%c0_36, %c0_37, %c0_38], %104 {strides = array<i32>} : memref<2x8x8xf32, #tpu.memory_space<vmem>>, vector<1x8x8xf32>,
    %cst_39 = arith.constant -1.000000e+30 : f32
    %cst_40 = arith.constant 0.000000e+00 : f32
    %105 = vector.broadcast %cst_39 : f32 to vector<8x8xf32>
    %106 = vector.broadcast %cst_40 : f32 to vector<8x8xf32>
    %107 = arith.select %20, %105, %106 : vector<8x8xi1>, vector<8x8xf32>
    %108 = vector.extract_strided_slice %15 {offsets = [8, 0], sizes = [8, 32], strides = [1, 1]} : vector<16x32xbf16> to vector<8x32xbf16>
    %109 = vector.extract_strided_slice %8 {offsets = [8, 0], sizes = [8, 32], strides = [1, 1]} : vector<16x64xbf16> to vector<8x32xbf16>
    %110 = vector.extract_strided_slice %8 {offsets = [8, 32], sizes = [8, 32], strides = [1, 1]} : vector<16x64xbf16> to vector<8x32xbf16>
    %cst_41 = arith.constant 0.000000e+00 : f32
    %111 = vector.broadcast %cst_41 : f32 to vector<8x8xf32>
    %112 = vector.extract_strided_slice %108 {offsets = [0, 0], sizes = [8, 8], strides = [1, 1]} : vector<8x32xbf16> to vector<8x8xbf16>
    %113 = vector.extract_strided_slice %109 {offsets = [0, 0], sizes = [8, 8], strides = [1, 1]} : vector<8x32xbf16> to vector<8x8xbf16>
    %114 = vector.extract_strided_slice %110 {offsets = [0, 0], sizes = [8, 8], strides = [1, 1]} : vector<8x32xbf16> to vector<8x8xbf16>
    %cst_42 = arith.constant dense<0.000000e+00> : vector<8x8xf32>
    %115 = tpu.matmul %112, %113, %cst_42 {dimension_numbers = #tpu.dot_dimension_numbers<[1], [1], [0], [0], [0, 0, 1, 0], [], []>} : vector<8x8xbf16>, vector<8x8xbf16>, vector<8x8xf32> -> vector<8x8xf32>
    %116 = arith.addf %115, %107 : vector<8x8xf32>
    %cst_43 = arith.constant dense<0xFF800000> : vector<8xf32>
    %117 = vector.multi_reduction <maximumf>, %116, %cst_43 [1] : vector<8x8xf32> to vector<8xf32>
    %118 = vector.shape_cast %117 : vector<8xf32> to vector<8x1xf32>
    %119 = vector.broadcast %118 : vector<8x1xf32> to vector<8x8xf32>
    %120 = arith.subf %116, %119 : vector<8x8xf32>
    %121 = math.exp %120 : vector<8x8xf32>
    %cst_44 = arith.constant dense<0.000000e+00> : vector<8xf32>
    %122 = vector.multi_reduction <add>, %121, %cst_44 [1] : vector<8x8xf32> to vector<8xf32>
    %123 = vector.shape_cast %122 : vector<8xf32> to vector<8x1xf32>
    %124 = vector.broadcast %123 : vector<8x1xf32> to vector<8x8xf32>
    %125 = arith.divf %121, %124 : vector<8x8xf32>
    %126 = arith.addf %111, %125 : vector<8x8xf32>
    %127 = arith.truncf %125 : vector<8x8xf32> to vector<8x8xbf16>
    %cst_45 = arith.constant dense<0.000000e+00> : vector<8x8xf32>
    %128 = tpu.matmul %127, %114, %cst_45 {dimension_numbers = #tpu.dot_dimension_numbers<[1], [0], [0], [1], [0, 0, 1, 1], [], []>} : vector<8x8xbf16>, vector<8x8xbf16>, vector<8x8xf32> -> vector<8x8xf32>
    %c8_46 = arith.constant 8 : index
    %c0_47 = arith.constant 0 : index
    %129 = vector.load %arg10[%c8_46, %c0_47] : memref<16x32xf32, #tpu.memory_space<vmem>>, vector<8x8xf32>
    tpu.vector_store %arg10[%c8_46, %c0_47], %128 {strides = array<i32>} : memref<16x32xf32, #tpu.memory_space<vmem>>, vector<8x8xf32>,
    %130 = vector.extract_strided_slice %108 {offsets = [0, 8], sizes = [8, 8], strides = [1, 1]} : vector<8x32xbf16> to vector<8x8xbf16>
    %131 = vector.extract_strided_slice %109 {offsets = [0, 8], sizes = [8, 8], strides = [1, 1]} : vector<8x32xbf16> to vector<8x8xbf16>
    %132 = vector.extract_strided_slice %110 {offsets = [0, 8], sizes = [8, 8], strides = [1, 1]} : vector<8x32xbf16> to vector<8x8xbf16>
    %cst_48 = arith.constant dense<0.000000e+00> : vector<8x8xf32>
    %133 = tpu.matmul %130, %131, %cst_48 {dimension_numbers = #tpu.dot_dimension_numbers<[1], [1], [0], [0], [0, 0, 1, 0], [], []>} : vector<8x8xbf16>, vector<8x8xbf16>, vector<8x8xf32> -> vector<8x8xf32>
    %134 = arith.addf %133, %107 : vector<8x8xf32>
    %cst_49 = arith.constant dense<0xFF800000> : vector<8xf32>
    %135 = vector.multi_reduction <maximumf>, %134, %cst_49 [1] : vector<8x8xf32> to vector<8xf32>
    %136 = vector.shape_cast %135 : vector<8xf32> to vector<8x1xf32>
    %137 = vector.broadcast %136 : vector<8x1xf32> to vector<8x8xf32>
    %138 = arith.subf %134, %137 : vector<8x8xf32>
    %139 = math.exp %138 : vector<8x8xf32>
    %cst_50 = arith.constant dense<0.000000e+00> : vector<8xf32>
    %140 = vector.multi_reduction <add>, %139, %cst_50 [1] : vector<8x8xf32> to vector<8xf32>
    %141 = vector.shape_cast %140 : vector<8xf32> to vector<8x1xf32>
    %142 = vector.broadcast %141 : vector<8x1xf32> to vector<8x8xf32>
    %143 = arith.divf %139, %142 : vector<8x8xf32>
    %144 = arith.addf %126, %143 : vector<8x8xf32>
    %145 = arith.truncf %143 : vector<8x8xf32> to vector<8x8xbf16>
    %cst_51 = arith.constant dense<0.000000e+00> : vector<8x8xf32>
    %146 = tpu.matmul %145, %132, %cst_51 {dimension_numbers = #tpu.dot_dimension_numbers<[1], [0], [0], [1], [0, 0, 1, 1], [], []>} : vector<8x8xbf16>, vector<8x8xbf16>, vector<8x8xf32> -> vector<8x8xf32>
    %c8_52 = arith.constant 8 : index
    %c8_53 = arith.constant 8 : index
    %147 = vector.load %arg10[%c8_52, %c8_53] : memref<16x32xf32, #tpu.memory_space<vmem>>, vector<8x8xf32>
    tpu.vector_store %arg10[%c8_52, %c8_53], %146 {strides = array<i32>} : memref<16x32xf32, #tpu.memory_space<vmem>>, vector<8x8xf32>,
    %148 = vector.extract_strided_slice %108 {offsets = [0, 16], sizes = [8, 8], strides = [1, 1]} : vector<8x32xbf16> to vector<8x8xbf16>
    %149 = vector.extract_strided_slice %109 {offsets = [0, 16], sizes = [8, 8], strides = [1, 1]} : vector<8x32xbf16> to vector<8x8xbf16>
    %150 = vector.extract_strided_slice %110 {offsets = [0, 16], sizes = [8, 8], strides = [1, 1]} : vector<8x32xbf16> to vector<8x8xbf16>
    %cst_54 = arith.constant dense<0.000000e+00> : vector<8x8xf32>
    %151 = tpu.matmul %148, %149, %cst_54 {dimension_numbers = #tpu.dot_dimension_numbers<[1], [1], [0], [0], [0, 0, 1, 0], [], []>} : vector<8x8xbf16>, vector<8x8xbf16>, vector<8x8xf32> -> vector<8x8xf32>
    %152 = arith.addf %151, %107 : vector<8x8xf32>
    %cst_55 = arith.constant dense<0xFF800000> : vector<8xf32>
    %153 = vector.multi_reduction <maximumf>, %152, %cst_55 [1] : vector<8x8xf32> to vector<8xf32>
    %154 = vector.shape_cast %153 : vector<8xf32> to vector<8x1xf32>
    %155 = vector.broadcast %154 : vector<8x1xf32> to vector<8x8xf32>
    %156 = arith.subf %152, %155 : vector<8x8xf32>
    %157 = math.exp %156 : vector<8x8xf32>
    %cst_56 = arith.constant dense<0.000000e+00> : vector<8xf32>
    %158 = vector.multi_reduction <add>, %157, %cst_56 [1] : vector<8x8xf32> to vector<8xf32>
    %159 = vector.shape_cast %158 : vector<8xf32> to vector<8x1xf32>
    %160 = vector.broadcast %159 : vector<8x1xf32> to vector<8x8xf32>
    %161 = arith.divf %157, %160 : vector<8x8xf32>
    %162 = arith.addf %144, %161 : vector<8x8xf32>
    %163 = arith.truncf %161 : vector<8x8xf32> to vector<8x8xbf16>
    %cst_57 = arith.constant dense<0.000000e+00> : vector<8x8xf32>
    %164 = tpu.matmul %163, %150, %cst_57 {dimension_numbers = #tpu.dot_dimension_numbers<[1], [0], [0], [1], [0, 0, 1, 1], [], []>} : vector<8x8xbf16>, vector<8x8xbf16>, vector<8x8xf32> -> vector<8x8xf32>
    %c8_58 = arith.constant 8 : index
    %c16_59 = arith.constant 16 : index
    %165 = vector.load %arg10[%c8_58, %c16_59] : memref<16x32xf32, #tpu.memory_space<vmem>>, vector<8x8xf32>
    tpu.vector_store %arg10[%c8_58, %c16_59], %164 {strides = array<i32>} : memref<16x32xf32, #tpu.memory_space<vmem>>, vector<8x8xf32>,
    %166 = vector.extract_strided_slice %108 {offsets = [0, 24], sizes = [8, 8], strides = [1, 1]} : vector<8x32xbf16> to vector<8x8xbf16>
    %167 = vector.extract_strided_slice %109 {offsets = [0, 24], sizes = [8, 8], strides = [1, 1]} : vector<8x32xbf16> to vector<8x8xbf16>
    %168 = vector.extract_strided_slice %110 {offsets = [0, 24], sizes = [8, 8], strides = [1, 1]} : vector<8x32xbf16> to vector<8x8xbf16>
    %cst_60 = arith.constant dense<0.000000e+00> : vector<8x8xf32>
    %169 = tpu.matmul %166, %167, %cst_60 {dimension_numbers = #tpu.dot_dimension_numbers<[1], [1], [0], [0], [0, 0, 1, 0], [], []>} : vector<8x8xbf16>, vector<8x8xbf16>, vector<8x8xf32> -> vector<8x8xf32>
    %170 = arith.addf %169, %107 : vector<8x8xf32>
    %cst_61 = arith.constant dense<0xFF800000> : vector<8xf32>
    %171 = vector.multi_reduction <maximumf>, %170, %cst_61 [1] : vector<8x8xf32> to vector<8xf32>
    %172 = vector.shape_cast %171 : vector<8xf32> to vector<8x1xf32>
    %173 = vector.broadcast %172 : vector<8x1xf32> to vector<8x8xf32>
    %174 = arith.subf %170, %173 : vector<8x8xf32>
    %175 = math.exp %174 : vector<8x8xf32>
    %cst_62 = arith.constant dense<0.000000e+00> : vector<8xf32>
    %176 = vector.multi_reduction <add>, %175, %cst_62 [1] : vector<8x8xf32> to vector<8xf32>
    %177 = vector.shape_cast %176 : vector<8xf32> to vector<8x1xf32>
    %178 = vector.broadcast %177 : vector<8x1xf32> to vector<8x8xf32>
    %179 = arith.divf %175, %178 : vector<8x8xf32>
    %180 = arith.addf %162, %179 : vector<8x8xf32>
    %181 = arith.truncf %179 : vector<8x8xf32> to vector<8x8xbf16>
    %cst_63 = arith.constant dense<0.000000e+00> : vector<8x8xf32>
    %182 = tpu.matmul %181, %168, %cst_63 {dimension_numbers = #tpu.dot_dimension_numbers<[1], [0], [0], [1], [0, 0, 1, 1], [], []>} : vector<8x8xbf16>, vector<8x8xbf16>, vector<8x8xf32> -> vector<8x8xf32>
    %c8_64 = arith.constant 8 : index
    %c24_65 = arith.constant 24 : index
    %183 = vector.load %arg10[%c8_64, %c24_65] : memref<16x32xf32, #tpu.memory_space<vmem>>, vector<8x8xf32>
    tpu.vector_store %arg10[%c8_64, %c24_65], %182 {strides = array<i32>} : memref<16x32xf32, #tpu.memory_space<vmem>>, vector<8x8xf32>,
    %cst_66 = arith.constant 2.500000e-01 : f32
    %184 = vector.broadcast %cst_66 : f32 to vector<8x8xf32>
    %185 = arith.mulf %180, %184 : vector<8x8xf32>
    %c1 = arith.constant 1 : index
    %c0_67 = arith.constant 0 : index
    %c0_68 = arith.constant 0 : index
    %186 = vector.load %arg9[%c1, %c0_67, %c0_68] : memref<2x8x8xf32, #tpu.memory_space<vmem>>, vector<1x8x8xf32>
    %187 = vector.shape_cast %186 : vector<1x8x8xf32> to vector<8x8xf32>
    %188 = vector.shape_cast %185 : vector<8x8xf32> to vector<1x8x8xf32>
    tpu.vector_store %arg9[%c1, %c0_67, %c0_68], %188 {strides = array<i32>} : memref<2x8x8xf32, #tpu.memory_space<vmem>>, vector<1x8x8xf32>,
    %c0_69 = arith.constant 0 : index
    %c0_70 = arith.constant 0 : index
    %189 = vector.load %arg10[%c0_69, %c0_70] : memref<16x32xf32, #tpu.memory_space<vmem>>, vector<16x32xf32>
    %190 = arith.truncf %189 : vector<16x32xf32> to vector<16x32xbf16>
    %c0_71 = arith.constant 0 : index
    %c0_72 = arith.constant 0 : index
    %191 = vector.load %arg6[%c0_71, %c0_72] : memref<32x32xbf16, #tpu.memory_space<vmem>>, vector<32x32xbf16>
    %cst_73 = arith.constant dense<0.000000e+00> : vector<16x32xf32>
    %192 = tpu.matmul %190, %191, %cst_73 {dimension_numbers = #tpu.dot_dimension_numbers<[1], [0], [0], [1], [0, 0, 1, 1], [], []>} : vector<16x32xbf16>, vector<32x32xbf16>, vector<16x32xf32> -> vector<16x32xf32>
    %c0_74 = arith.constant 0 : index
    %c0_75 = arith.constant 0 : index
    %193 = vector.load %arg7[%c0_74, %c0_75] : memref<1x32xf32, #tpu.memory_space<vmem>>, vector<1x32xf32>
    %194 = vector.broadcast %193 : vector<1x32xf32> to vector<16x32xf32>
    %195 = arith.addf %192, %194 : vector<16x32xf32>
    %196 = vector.shape_cast %195 : vector<16x32xf32> to vector<2x8x32xf32>
    %197 = arith.addf %196, %0 : vector<2x8x32xf32>
    %c0_76 = arith.constant 0 : index
    %c0_77 = arith.constant 0 : index
    %c0_78 = arith.constant 0 : index
    %198 = vector.load %arg8[%c0_76, %c0_77, %c0_78] : memref<2x8x32xf32, #tpu.memory_space<vmem>>, vector<2x8x32xf32>
    tpu.vector_store %arg8[%c0_76, %c0_77, %c0_78], %197 {strides = array<i32>} : memref<2x8x32xf32, #tpu.memory_space<vmem>>, vector<2x8x32xf32>,
    return
  }
  func.func @transform_0(%arg0: i32) -> (i32, i32, i32) {
    %c0_i32 = arith.constant 0 : i32
    %c0_i32_0 = arith.constant 0 : i32
    %c0_i32_1 = arith.constant 0 : i32
    return %arg0, %c0_i32, %c0_i32_0 : i32, i32, i32
  }
  func.func @transform_1(%arg0: i32) -> (i32, i32) {
    %c0_i32 = arith.constant 0 : i32
    %c0_i32_0 = arith.constant 0 : i32
    %c0_i32_1 = arith.constant 0 : i32
    return %c0_i32, %c0_i32_0 : i32, i32
  }
  func.func @transform_2(%arg0: i32) -> (i32, i32) {
    %c0_i32 = arith.constant 0 : i32
    %c0_i32_0 = arith.constant 0 : i32
    %c0_i32_1 = arith.constant 0 : i32
    return %c0_i32, %c0_i32_0 : i32, i32
  }
  func.func @transform_3(%arg0: i32) -> (i32, i32) {
    %c0_i32 = arith.constant 0 : i32
    %c0_i32_0 = arith.constant 0 : i32
    %c0_i32_1 = arith.constant 0 : i32
    return %c0_i32, %c0_i32_0 : i32, i32
  }
  func.func @transform_4(%arg0: i32) -> (i32, i32) {
    %c0_i32 = arith.constant 0 : i32
    %c0_i32_0 = arith.constant 0 : i32
    %c0_i32_1 = arith.constant 0 : i32
    return %c0_i32, %c0_i32_0 : i32, i32
  }
  func.func @transform_5(%arg0: i32) -> (i32, i32) {
    %c0_i32 = arith.constant 0 : i32
    %c0_i32_0 = arith.constant 0 : i32
    %c0_i32_1 = arith.constant 0 : i32
    return %c0_i32, %c0_i32_0 : i32, i32
  }
  func.func @transform_6(%arg0: i32) -> (i32, i32) {
    %c0_i32 = arith.constant 0 : i32
    %c0_i32_0 = arith.constant 0 : i32
    %c0_i32_1 = arith.constant 0 : i32
    return %c0_i32, %c0_i32_0 : i32, i32
  }
  func.func @transform_7(%arg0: i32) -> (i32, i32, i32) {
    %c0_i32 = arith.constant 0 : i32
    %c0_i32_0 = arith.constant 0 : i32
    %c0_i32_1 = arith.constant 0 : i32
    return %arg0, %c0_i32, %c0_i32_0 : i32, i32, i32
  }
  func.func @transform_8(%arg0: i32) -> (i32, i32, i32) {
    %c0_i32 = arith.constant 0 : i32
    %c0_i32_0 = arith.constant 0 : i32
    %c0_i32_1 = arith.constant 0 : i32
    return %arg0, %c0_i32, %c0_i32_0 : i32, i32, i32
  }
}

</mosaic_0001>

<bundles_post_ra>
// kernel: tpu_custom_call.1
= control target key start
LH: loop header
LB: loop body
LE: loop exit
PB: predicated region body
PF: predicated region fallthrough
CT: control target
= control target key end

     0   :  { %14 = vsyncpa [#allocation4], 0  ;;  %s1402_s0 = inlined_call_operand.hbm [shape: f32[2,8,32], index: 0, kind: input, shape index: {}]   ;;  %s1403_s1 = inlined_call_operand.hbm [shape: bf16[32,32], index: 1, kind: input, shape index: {}]   ;;  %s1404_s2 = inlined_call_operand.vmem [shape: f32[1,32], index: 2, kind: input, shape index: {}]   ;;  %s1405_s3 = inlined_call_operand.hbm [shape: bf16[32,64], index: 3, kind: input, shape index: {}]   ;;  %s1406_s4 = inlined_call_operand.vmem [shape: f32[1,64], index: 4, kind: input, shape index: {}]   ;;  %s1407_s5 = inlined_call_operand.hbm [shape: bf16[32,32], index: 5, kind: input, shape index: {}]   ;;  %s1408_s6 = inlined_call_operand.vmem [shape: f32[1,32], index: 6, kind: input, shape index: {}]   ;;  %s1409_s7 = inlined_call_operand.hbm [shape: f32[2,8,32], index: 7, kind: output, shape index: {0}]   ;;  %s1410_s8 = inlined_call_operand.hbm [shape: f32[2,8,8], index: 8, kind: output, shape index: {1}]  }
   0x1   :  { %15 = vsyncpa [#allocation7], 0 }
   0x2   :  { %16 = vsyncpa [#allocation10], 0 }
   0x3   :  { %17 = vsyncpa [#allocation5], 0  ;;  %s36_s29 = sshll.u32 %s1403_s1, 4  ;;  %s37_s29 = int_to_ptr.hbm [resolvable:$true] %s36_s29 }
   0x4   :  { %18 = vsyncpa [#allocation13], 0  ;;  %s1132_s30 = smov [#allocation6]   ;;  %s23_s12 = sshll.u32 %s1402_s0, 4  ;;  %s24_s12 = int_to_ptr.hbm [resolvable:$true] %s23_s12 }
   0x5   :  { %s38_s9 = sshll.u32 %s1132_s30, 4  ;;  %s1133_s13 = smov 64   ;;  %s39_s9 = int_to_ptr.vmem [resolvable:$true] %s38_s9 }
   0x6   :  { %s1134_s14 = smov 4   ;;  %s1135_s15 = smov [#allocation3]  }
   0x7   :  { %44 = dma.hbm_to_vmem [thread:$0]  %s37_s29, 256, %s39_s9, [#allocation7], %s1133_s13, %s1133_s13, %s1134_s14  }
   0x8   :  { %s25_s16 = sshll.u32 %s1135_s15, 4  ;;  %s1136_s17 = smov 128   ;;  %s26_s16 = int_to_ptr.vmem [resolvable:$true] %s25_s16 }
   0x9   :  { %s1137_s18 = smov 8   ;;  %s51_s20 = sshll.u32 %s1405_s3, 4  ;;  %s52_s20 = int_to_ptr.hbm [resolvable:$true] %s51_s20 }
   0xa   :  { %31 = dma.hbm_to_vmem [thread:$0]  %s24_s12, 256, %s26_s16, [#allocation4], %s1136_s17, %s1136_s17, %s1137_s18  }
   0xb   :  { %s1138_s21 = smov [#allocation8]   ;;  %s66_s24 = sshll.u32 %s1407_s5, 4  ;;  %s67_s24 = int_to_ptr.hbm [resolvable:$true] %s66_s24 }
   0xc   :  { %s53_s0 = sshll.u32 %s1138_s21, 4  ;;  %s1139_s25 = smov [#allocation9]   ;;  %s54_s0 = int_to_ptr.vmem [resolvable:$true] %s53_s0 }
   0xd   :  { %59 = dma.hbm_to_vmem [thread:$0]  %s52_s20, 256, %s54_s0, [#allocation7], %s1133_s13, %s1133_s13, %s1134_s14  }
   0xe   :  { %s68_s26 = sshll.u32 %s1139_s25, 4  ;;  %s69_s26 = int_to_ptr.vmem [resolvable:$true] %s68_s26 }
   0xf   :  { %74 = dma.hbm_to_vmem [thread:$0]  %s67_s24, 256, %s69_s26, [#allocation10], %s1133_s13, %s1133_s13, %s1134_s14  }
  0x10   :  { %1122 = dma.done.wait [#allocation4], 256  }
  0x11   :  { %1123 = vsyncadd [#allocation4], 4294967040 }
  0x12   :  { %1124 = dma.done.wait [#allocation7], 512  }
  0x13   :  { %1125 = vsyncadd [#allocation7], 4294966784 }
  0x14   :  { %1126 = dma.done.wait [#allocation10], 256  }
  0x15   :  { %1127 = vsyncadd [#allocation10], 4294967040  ;;  %v918_v0 = vld [vmem:[#allocation8 + $0x8] sm:$0xff]  ;;  %v920_v1 = vld [vmem:[#allocation6 + $0x8] sm:$0xff]  ;;  %vm123_vm0 = vcmask 261120   ;;  %vm185_vm1 = vcmask 64512   ;;  %v179_v41 = vlaneseq }
  0x16   :  { %v917_v2 = vld [vmem:[#allocation8] sm:$0xff]  ;;  %v1214_v4 = vld [vmem:[#allocation3 + $0x8] sm:$0xff]  ;;  %133 = vmatpush.bf16.msra.mxu0 %v918_v0  ;;  %169 = vmatpush.bf16.msra.mxu1 %v920_v1  ;;  %v919_v5 = vld [vmem:[#allocation6] sm:$0xff]  ;;  %s1141_s29 = smov 96   ;;  %s1143_s30 = smov 104   ;;  %vm239_vm2 = vcmask 1043456  }
  0x17   :  { %v1212_v3 = vld [vmem:[#allocation3] sm:$0xff]  ;;  %v97_v7 = vpack.c.bf16 %v1214_v4, %v1214_v4  ;;  %v943_v11 = vld [vmem:[%s1406_s4] ss:$0 sm:$0xff]  ;;  %s1140_s4 = smov 120   ;;  %v180_v43 = vshrl.u32 %v179_v41, 7  ;;  %v182_v44 = vand.u32 127, %v179_v41 }
  0x18   :  { %v96_v6 = vpack.c.bf16 %v1212_v3, %v1212_v3  ;;  %v944_v12 = vld [vmem:[%s1404_s2] ss:$0 sm:$0xff]  ;;  %s1142_s2 = smov 112   ;;  %v1144_v46 = vmov 0.0   ;;  %s1145_s9 = smov 72  }
  0x19   :  { %v109_v9 = vunpack.c.l.b16 %v97_v7  ;;  %vm183_vm3 = vcmp.gt.s32.totalorder %v182_v44, %v180_v43  ;;  %s1146_s10 = smov 80   ;;  %s1147_s11 = smov 88  }
  0x1a   :  { %v108_v8 = vunpack.c.l.b16 %v96_v6  ;;  %134 = vmatpush.bf16.msra.mxu0 %v917_v2  ;;  %170 = vmatpush.bf16.msra.mxu1 %v919_v5  ;;  %v1254_v47 = vsel %vm183_vm3, -1e+30, %v1144_v46  ;;  %s1148_s12 = smov 16   ;;  %s1149_s13 = smov 24  }
  0x1b   :  { %s1150_s14 = smov [#allocation12]   ;;  %s854_s19 = sshll.u32 %s1410_s8, 4  ;;  %s855_s19 = int_to_ptr.hbm [resolvable:$true] %s854_s19 }
  0x1c   :  { %v110_v10 = vpack.c.b16 %v109_v9, %v108_v8  ;;  %s852_s15 = sshll.u32 %s1150_s14, 4  ;;  %s1151_s0 = smov [#allocation11]   ;;  %s853_s15 = int_to_ptr.vmem [resolvable:$true] %s852_s15 }
  0x1d   :  { %s839_s22 = sshll.u32 %s1151_s0, 4  ;;  %s841_s24 = sshll.u32 %s1409_s7, 4  ;;  %s840_s22 = int_to_ptr.vmem [resolvable:$true] %s839_s22  ;;  %s842_s24 = int_to_ptr.hbm [resolvable:$true] %s841_s24 }
  0x1e   :  { %882 = vmatmul.msk.bf16.vlgmr.msra.gmra.mxu0 %vm123_vm0, %v110_v10  ;;  %891 = vmatmul.msk.bf16.vlgmr.msra.gmra.mxu1 %vm123_vm0, %v110_v10 }
  0x9b   :  { %v136_v13 = vpop.f32.mrf.mxu0  ;;  %v172_v14 = vpop.f32.mrf.mxu1 }
  0x9c   :  { %v137_v15 = vadd.f32 %v943_v11, %v136_v13  ;;  %v173_v16 = vadd.f32 %v944_v12, %v172_v14 }
  0x9e   :  { %v141_v17 = vpack.c.bf16 %v137_v15, %v137_v15  ;;  %v177_v18 = vpack.c.bf16 %v173_v16, %v173_v16 }
  0xa0   :  { %v232_v19 = vunpack.c.l.b16 %v141_v17  ;;  %v258_v20 = vunpack.c.l.b16 %v177_v18  ;;  %v190_v21 = vsel %vm185_vm1, %v141_v17, 0 }
  0xa1   :  { %199 = vmatpush.bf16.xpose.msra.mxu2 %v190_v21 }
  0xa2   :  { %v1229_v22 = vpack.c.b16 %v232_v19, %v232_v19  ;;  %v259_v23 = vpack.c.b16 %v258_v20, %v258_v20 }
  0xa3   :  { %v138_v24 = vpop.f32.mrf.mxu0  ;;  %v174_v25 = vpop.f32.mrf.mxu1 }
  0xa4   :  { %260 = vrot.lane.b32.xlu2 %v259_v23, %s1140_s4  ;;  %234 = vrot.lane.b32.xlu1 %v1229_v22, %s1141_s29  ;;  %v139_v26 = vadd.f32 %v943_v11, %v138_v24  ;;  %v175_v27 = vadd.f32 %v944_v12, %v174_v25 }
  0xa6   :  { %v142_v28 = vpack.c.bf16 %v139_v26, %v139_v26  ;;  %v178_v29 = vpack.c.bf16 %v175_v27, %v175_v27 }
  0xa8   :  { %892 = vmatmul.msk.bf16.vlgmr.msra.gmra.mxu2 %vm185_vm1, %v177_v18  ;;  %v536_v30 = vunpack.c.l.b16 %v142_v28  ;;  %v561_v31 = vunpack.c.l.b16 %v178_v29  ;;  %v494_v37 = vsel %vm185_vm1, %v142_v28, 0 }
  0xaa   :  { %v1239_v32 = vpack.c.b16 %v536_v30, %v536_v30  ;;  %v562_v33 = vpack.c.b16 %v561_v31, %v561_v31 }
  0xac   :  { %338 = vrot.lane.b32.xlu2 %v1229_v22, %s1142_s2  ;;  %262 = vrot.lane.b32.xlu1 %v1229_v22, %s1140_s4 }
  0xb4   :  { %412 = vrot.lane.b32.xlu2 %v259_v23, %s1143_s30  ;;  %336 = vrot.lane.b32.xlu1 %v259_v23, %s1142_s2 }
  0xbc   :  { %563 = vrot.lane.b32.xlu2 %v562_v33, %s1140_s4  ;;  %565 = vrot.lane.b32.xlu1 %v1239_v32, %s1140_s4 }
  0xc4   :  { %715 = vrot.lane.b32.xlu2 %v1239_v32, %s1143_s30  ;;  %640 = vrot.lane.b32.xlu1 %v1239_v32, %s1142_s2 }
  0xcc   :  { %713 = vrot.lane.b32.xlu1 %v562_v33, %s1143_s30 }
  0xfe   :  { %v1247_v34 = vpop.permute.xlu2 %260 }
 0x106   :  { %v339_v35 = vpop.permute.xlu2 %338 }
 0x107   :  { %v344_v36 = vsel %vm185_vm1, %v339_v35, 0 }
 0x108   :  { %353 = vmatpush.bf16.xpose.msrb.mxu1 %v344_v36 }
 0x10e   :  { %v413_v23 = vpop.permute.xlu2 %412 }
 0x110   :  { %503 = vmatpush.bf16.xpose.msra.mxu1 %v494_v37 }
 0x116   :  { %v235_v38 = vpop.permute.xlu1 %234  ;;  %v564_v25 = vpop.permute.xlu2 %563 }
 0x117   :  { %v241_v39 = vsel %vm239_vm2, %v235_v38, 0 }
 0x118   :  { %250 = vmatpush.bf16.msra.mxu3 %v241_v39 }
 0x11e   :  { %v263_v40 = vpop.permute.xlu1 %262  ;;  %v716_v26 = vpop.permute.xlu2 %715 }
 0x11f   :  { %v268_v42 = vsel %vm185_vm1, %v263_v40, 0  ;;  %v721_v27 = vsel %vm185_vm1, %v716_v26, 0 }
 0x120   :  { %277 = vmatpush.bf16.xpose.msrb.mxu3 %v268_v42 }
 0x126   :  { %v337_v45 = vpop.permute.xlu1 %336 }
 0x127   :  { %896 = vmatmul.msk.bf16.vlgmr.msrb.gmra.mxu1 %vm185_vm1, %v337_v45 }
 0x12b   :  { %v201_v48 = vpop.f32.mrf.mxu2 }
 0x12c   :  { %v202_v49 = vadd.f32 %v201_v48, %v1254_v47 }
 0x12e   :  { %v566_v50 = vpop.permute.xlu1 %565  ;;  %v205_v51 = vsel %vm185_vm1, %v202_v49, -inf }
 0x12f   :  { %206 = vmax.xlane.f32.xlu0 %v205_v51  ;;  %v571_v24 = vsel %vm185_vm1, %v566_v50, 0 }
 0x133   :  { %v203_v52 = vpop.f32.mrf.mxu2 }
 0x136   :  { %v641_v53 = vpop.permute.xlu1 %640 }
 0x137   :  { %v646_v54 = vsel %vm185_vm1, %v641_v53, 0  ;;  %900 = vmatmul.msk.bf16.vlgmr.msra.gmra.mxu1 %vm185_vm1, %v178_v29 }
 0x138   :  { %655 = vmatpush.bf16.xpose.msrb.mxu1 %v646_v54 }
 0x13e   :  { %v714_v28 = vpop.permute.xlu1 %713 }
 0x1a2   :  { %v207_v55 = vpop.xlane.xlu0 %206 }
 0x1a3   :  { %v208_v56 = vsub.f32 %v202_v49, %v207_v55 }
 0x1a4   :  { %v355_v57 = vpop.f32.mrf.mxu1 }
 0x1a5   :  { %v209_v58 = vmul.f32 1.442695, %v208_v56  ;;  %v356_v2 = vadd.f32 %v355_v57, %v1254_v47 }
 0x1a7   :  { %946 = vpow2.f32 %v209_v58  ;;  %v359_v5 = vsel %vm185_vm1, %v356_v2, -inf }
 0x1ac   :  { %v357_v59 = vpop.f32.mrf.mxu1 }
 0x1ad   :  { %v947_v60 = vpop.eup %946 }
 0x1ae   :  { %v211_v61 = vsel %vm185_vm1, %v947_v60, 0.0 }
 0x1af   :  { %212 = vadd.xlane.f32.xlu0 %v211_v61 }
 0x1b4   :  { %v505_v62 = vpop.f32.mrf.mxu1 }
 0x1b5   :  { %v506_v63 = vadd.f32 %v505_v62, %v1254_v47 }
 0x1b7   :  { %v509_v0 = vsel %vm185_vm1, %v506_v63, -inf }
 0x1b8   :  { %510 = vmax.xlane.f32.xlu2 %v509_v0 }
 0x1bc   :  { %v507_v1 = vpop.f32.mrf.mxu1 }
 0x1c3   :  { %414 = vrot.lane.b32.xlu0 %v1229_v22, %s1143_s30 }
 0x1cb   :  { %638 = vrot.lane.b32.xlu0 %v562_v33, %s1142_s2 }
 0x1f5   :  { %360 = vmax.xlane.f32.xlu0 %v359_v5 }
 0x222   :  { %v213_v6 = vpop.xlane.xlu0 %212 }
 0x223   :  { %948 = vrcp.f32 %v213_v6  ;;  %v225_v10 = vand.u32 2147483648, %v213_v6  ;;  %v223_v12 = vand.u32 2147483647, %v213_v6  ;;  %vm219_vm5 = vweird.f32 %v213_v6 }
 0x225   :  { %v226_v14 = vor.u32 1.1754944e-38, %v225_v10  ;;  %vm224_vm7 = vcmp.eq.f32.partialorder %v223_v12, 8.507059e+37 }
 0x229   :  { %v949_v7 = vpop.eup %948 }
 0x22a   :  { %v215_v8 = vmul.f32 %v949_v7, %v213_v6  ;;  %vm220_vm4 = vweird.f32 %v949_v7 }
 0x22b   :  { %vm221_vm6 = vmor %vm219_vm5, %vm220_vm4  ;;  %v511_v37 = vpop.xlane.xlu2 %510 }
 0x22c   :  { %v216_v9 = vsub.f32 1.0, %v215_v8  ;;  %v512_v41 = vsub.f32 %v506_v63, %v511_v37 }
 0x22e   :  { %v217_v11 = vmul.f32 %v949_v7, %v216_v9  ;;  %v513_v43 = vmul.f32 1.442695, %v512_v41 }
 0x230   :  { %v218_v13 = vadd.f32 %v949_v7, %v217_v11 }
 0x232   :  { %v222_v15 = vsel %vm221_vm6, %v949_v7, %v218_v13 }
 0x233   :  { %v227_v16 = vsel %vm224_vm7, %v226_v14, %v222_v15 }
 0x234   :  { %v1268_v17 = vmul.f32 %v947_v60, %v227_v16 }
 0x235   :  { %v415_v18 = vpop.permute.xlu0 %414 }
 0x236   :  { %v420_v19 = vsel %vm185_vm1, %v415_v18, 0  ;;  %v230_v20 = vpack.c.bf16 %v1268_v17, %v1268_v17 }
 0x238   :  { %893 = vmatmul.msk.bf16.vlgmr.msra.gmra.mxu3 %vm185_vm1, %v230_v20 }
 0x239   :  { %429 = vmatpush.bf16.xpose.msra.mxu3 %v420_v19 }
 0x23d   :  { %v639_v21 = vpop.permute.xlu0 %638 }
 0x23e   :  { %904 = vmatmul.msk.bf16.vlgmr.msrb.gmra.mxu1 %vm185_vm1, %v639_v21 }
 0x248   :  { %894 = vmatmul.msk.bf16.vlgmr.msrb.gmra.mxu3 %vm185_vm1, %v1247_v34 }
 0x249   :  { %580 = vmatpush.bf16.xpose.msrb.mxu3 %v571_v24 }
 0x258   :  { %898 = vmatmul.msk.bf16.vlgmr.msra.gmra.mxu3 %vm185_vm1, %v413_v23 }
 0x259   :  { %730 = vmatpush.bf16.xpose.msra.mxu3 %v721_v27 }
 0x268   :  { %902 = vmatmul.msk.bf16.vlgmr.msrb.gmra.mxu3 %vm185_vm1, %v564_v25  ;;  %v361_v29 = vpop.xlane.xlu0 %360 }
 0x269   :  { %v362_v30 = vsub.f32 %v356_v2, %v361_v29 }
 0x26b   :  { %v363_v31 = vmul.f32 1.442695, %v362_v30 }
 0x26d   :  { %950 = vpow2.f32 %v363_v31 }
 0x26e   :  { %952 = vpow2.f32 %v513_v43 }
 0x273   :  { %v1288_v38 = vpop.eup %950 }
 0x274   :  { %v365_v42 = vsel %vm185_vm1, %v1288_v38, 0.0  ;;  %v1294_v48 = vpop.eup %952 }
 0x275   :  { %v515_v50 = vsel %vm185_vm1, %v1294_v48, 0.0 }
 0x278   :  { %906 = vmatmul.msk.bf16.vlgmr.msra.gmra.mxu3 %vm185_vm1, %v714_v28 }
 0x2bb   :  { %v252_v33 = vpop.f32.mrf.mxu3  ;;  %v657_v35 = vpop.f32.mrf.mxu1 }
 0x2bc   :  { %256 = vst.msk [vmem:[#allocation2] sm:$0xff] %vm185_vm1, %v252_v33  ;;  %v1284_v34 = vadd.f32 %v657_v35, %v1254_v47 }
 0x2be   :  { %v661_v36 = vsel %vm185_vm1, %v1284_v34, -inf }
 0x2bf   :  { %662 = vmax.xlane.f32.xlu2 %v661_v36 }
 0x2c3   :  { %v254_v39 = vpop.f32.mrf.mxu3  ;;  %v659_v40 = vpop.f32.mrf.mxu1 }
 0x2c7   :  { %366 = vadd.xlane.f32.xlu2 %v365_v42 }
 0x2cb   :  { %v279_v44 = vpop.f32.mrf.mxu3 }
 0x2cc   :  { %v280_v45 = vadd.f32 %v279_v44, %v1254_v47 }
 0x2ce   :  { %v283_v46 = vsel %vm185_vm1, %v280_v45, -inf }
 0x2cf   :  { %284 = vmax.xlane.f32.xlu2 %v283_v46 }
 0x2d3   :  { %v281_v49 = vpop.f32.mrf.mxu3 }
 0x2d7   :  { %516 = vadd.xlane.f32.xlu2 %v515_v50 }
 0x2db   :  { %v431_v51 = vpop.f32.mrf.mxu3 }
 0x2dc   :  { %v432_v52 = vadd.f32 %v431_v51, %v1254_v47 }
 0x2de   :  { %v435_v53 = vsel %vm185_vm1, %v432_v52, -inf }
 0x2df   :  { %436 = vmax.xlane.f32.xlu1 %v435_v53 }
 0x2e3   :  { %v433_v54 = vpop.f32.mrf.mxu3 }
 0x2eb   :  { %v582_v55 = vpop.f32.mrf.mxu3 }
 0x2ec   :  { %v583_v56 = vadd.f32 %v582_v55, %v1254_v47 }
 0x2ee   :  { %v586_v57 = vsel %vm185_vm1, %v583_v56, -inf }
 0x2ef   :  { %587 = vmax.xlane.f32.xlu0 %v586_v57  ;;  %461 = vrot.lane.b32.xlu2 %v1229_v22, %s1145_s9 }
 0x2f3   :  { %v584_v58 = vpop.f32.mrf.mxu3 }
 0x2fb   :  { %v732_v59 = vpop.f32.mrf.mxu3 }
 0x2fc   :  { %v1305_v60 = vadd.f32 %v732_v59, %v1254_v47 }
 0x2fe   :  { %v736_v61 = vsel %vm185_vm1, %v1305_v60, -inf }
 0x2ff   :  { %737 = vmax.xlane.f32.xlu1 %v736_v61 }
 0x303   :  { %v734_v62 = vpop.f32.mrf.mxu3 }
 0x318   :  { %385 = vrot.lane.b32.xlu1 %v1229_v22, %s1146_s10 }
 0x332   :  { %v663_v63 = vpop.xlane.xlu2 %662 }
 0x333   :  { %v664_v21 = vsub.f32 %v1284_v34, %v663_v63 }
 0x335   :  { %v665_v24 = vmul.f32 1.442695, %v664_v21 }
 0x33a   :  { %v367_v0 = vpop.xlane.xlu2 %366 }
 0x33b   :  { %v379_v25 = vand.u32 2147483648, %v367_v0  ;;  %vm373_vm9 = vweird.f32 %v367_v0  ;;  %v377_v26 = vand.u32 2147483647, %v367_v0 }
 0x33d   :  { %v380_v29 = vor.u32 1.1754944e-38, %v379_v25  ;;  %vm378_vm11 = vcmp.eq.f32.partialorder %v377_v26, 8.507059e+37 }
 0x342   :  { %v285_v1 = vpop.xlane.xlu2 %284 }
 0x343   :  { %v286_v2 = vsub.f32 %v280_v45, %v285_v1 }
 0x345   :  { %v287_v5 = vmul.f32 1.442695, %v286_v2 }
 0x347   :  { %954 = vpow2.f32 %v287_v5 }
 0x34a   :  { %v517_v43 = vpop.xlane.xlu2 %516 }
 0x34b   :  { %vm523_vm6 = vweird.f32 %v517_v43 }
 0x34d   :  { %v1311_v6 = vpop.eup %954 }
 0x34e   :  { %v289_v47 = vsel %vm185_vm1, %v1311_v6, 0.0 }
 0x34f   :  { %290 = vadd.xlane.f32.xlu0 %v289_v47 }
 0x352   :  { %v437_v7 = vpop.xlane.xlu1 %436  ;;  %v462_v57 = vpop.permute.xlu2 %461 }
 0x353   :  { %v438_v8 = vsub.f32 %v432_v52, %v437_v7  ;;  %v467_v63 = vsel %vm239_vm2, %v462_v57, 0 }
 0x355   :  { %v439_v9 = vmul.f32 1.442695, %v438_v8 }
 0x357   :  { %956 = vpow2.f32 %v439_v9 }
 0x35d   :  { %v1315_v10 = vpop.eup %956 }
 0x35e   :  { %v441_v11 = vsel %vm185_vm1, %v1315_v10, 0.0 }
 0x35f   :  { %442 = vadd.xlane.f32.xlu1 %v441_v11 }
 0x362   :  { %v588_v12 = vpop.xlane.xlu0 %587 }
 0x363   :  { %v589_v13 = vsub.f32 %v583_v56, %v588_v12  ;;  %309 = vrot.lane.b32.xlu0 %v1229_v22, %s1147_s11 }
 0x365   :  { %v590_v14 = vmul.f32 1.442695, %v589_v13 }
 0x367   :  { %958 = vpow2.f32 %v590_v14  ;;  %v527_v14 = vand.u32 2147483647, %v517_v43 }
 0x368   :  { %960 = vrcp.f32 %v367_v0 }
 0x369   :  { %962 = vpow2.f32 %v665_v24 }
 0x36d   :  { %v1320_v15 = vpop.eup %958 }
 0x36e   :  { %v592_v16 = vsel %vm185_vm1, %v1320_v15, 0.0  ;;  %v961_v18 = vpop.eup %960 }
 0x36f   :  { %593 = vadd.xlane.f32.xlu2 %v592_v16  ;;  %v369_v19 = vmul.f32 %v961_v18, %v367_v0  ;;  %vm374_vm8 = vweird.f32 %v961_v18  ;;  %v1328_v31 = vpop.eup %962 }
 0x370   :  { %vm375_vm10 = vmor %vm373_vm9, %vm374_vm8  ;;  %v667_v36 = vsel %vm185_vm1, %v1328_v31, 0.0 }
 0x371   :  { %v370_v20 = vsub.f32 1.0, %v369_v19 }
 0x372   :  { %v738_v27 = vpop.xlane.xlu1 %737 }
 0x373   :  { %v371_v23 = vmul.f32 %v961_v18, %v370_v20  ;;  %v739_v39 = vsub.f32 %v1305_v60, %v738_v27 }
 0x375   :  { %v372_v22 = vadd.f32 %v961_v18, %v371_v23 }
 0x377   :  { %v376_v28 = vsel %vm375_vm10, %v961_v18, %v372_v22  ;;  %vm528_vm10 = vcmp.eq.f32.partialorder %v527_v14, 8.507059e+37 }
 0x378   :  { %538 = vrot.lane.b32.xlu1 %v1239_v32, %s1141_s29  ;;  %v381_v30 = vsel %vm378_vm11, %v380_v29, %v376_v28 }
 0x379   :  { %v1331_v33 = vmul.f32 %v1288_v38, %v381_v30  ;;  %v740_v38 = vmul.f32 1.442695, %v739_v39 }
 0x37b   :  { %v384_v37 = vpack.c.bf16 %v1331_v33, %v1331_v33  ;;  %964 = vpow2.f32 %v740_v38 }
 0x381   :  { %v1344_v40 = vpop.eup %964 }
 0x382   :  { %v742_v41 = vsel %vm185_vm1, %v1344_v40, 0.0 }
 0x387   :  { %612 = vrot.lane.b32.xlu2 %v1239_v32, %s1147_s11 }
 0x38a   :  { %v386_v35 = vpop.permute.xlu1 %385 }
 0x38b   :  { %v391_v34 = vsel %vm239_vm2, %v386_v35, 0 }
 0x38c   :  { %400 = vmatpush.bf16.msrb.mxu2 %v391_v34 }
 0x38d   :  { %668 = vadd.xlane.f32.xlu0 %v667_v36 }
 0x38f   :  { %897 = vmatmul.msk.bf16.vlgmr.msrb.gmra.mxu2 %vm185_vm1, %v384_v37  ;;  %687 = vrot.lane.b32.xlu2 %v1239_v32, %s1146_s10 }
 0x397   :  { %762 = vrot.lane.b32.xlu2 %v1239_v32, %s1145_s9 }
 0x3a2   :  { %743 = vadd.xlane.f32.xlu1 %v742_v41 }
 0x3c2   :  { %v291_v42 = vpop.xlane.xlu0 %290 }
 0x3c3   :  { %966 = vrcp.f32 %v291_v42  ;;  %v303_v50 = vand.u32 2147483648, %v291_v42  ;;  %v301_v51 = vand.u32 2147483647, %v291_v42  ;;  %vm297_vm13 = vweird.f32 %v291_v42 }
 0x3c4   :  { %968 = vrcp.f32 %v517_v43 }
 0x3c5   :  { %v304_v54 = vor.u32 1.1754944e-38, %v303_v50  ;;  %vm302_vm15 = vcmp.eq.f32.partialorder %v301_v51, 8.507059e+37 }
 0x3c9   :  { %v967_v44 = vpop.eup %966 }
 0x3ca   :  { %v293_v45 = vmul.f32 %v967_v44, %v291_v42  ;;  %vm298_vm12 = vweird.f32 %v967_v44  ;;  %v969_v52 = vpop.eup %968 }
 0x3cb   :  { %vm299_vm14 = vmor %vm297_vm13, %vm298_vm12  ;;  %v519_v56 = vmul.f32 %v969_v52, %v517_v43  ;;  %vm524_vm4 = vweird.f32 %v969_v52 }
 0x3cc   :  { %v294_v46 = vsub.f32 1.0, %v293_v45  ;;  %vm525_vm8 = vmor %vm523_vm6, %vm524_vm4 }
 0x3cd   :  { %v520_v62 = vsub.f32 1.0, %v519_v56 }
 0x3ce   :  { %v295_v49 = vmul.f32 %v967_v44, %v294_v46 }
 0x3cf   :  { %v521_v5 = vmul.f32 %v969_v52, %v520_v62 }
 0x3d0   :  { %v296_v32 = vadd.f32 %v967_v44, %v295_v49 }
 0x3d1   :  { %v522_v11 = vadd.f32 %v969_v52, %v521_v5 }
 0x3d2   :  { %v300_v53 = vsel %vm299_vm14, %v967_v44, %v296_v32  ;;  %v443_v55 = vpop.xlane.xlu1 %442 }
 0x3d3   :  { %970 = vrcp.f32 %v443_v55  ;;  %v305_v58 = vsel %vm302_vm15, %v304_v54, %v300_v53  ;;  %v455_v7 = vand.u32 2147483648, %v443_v55  ;;  %v453_v9 = vand.u32 2147483647, %v443_v55 }
 0x3d4   :  { %v306_v60 = vmul.f32 %v1311_v6, %v305_v58  ;;  %v529_v6 = vand.u32 2147483648, %v517_v43  ;;  %vm449_vm5 = vweird.f32 %v443_v55  ;;  %v526_v20 = vsel %vm525_vm8, %v969_v52, %v522_v11 }
 0x3d5   :  { %v310_v59 = vpop.permute.xlu0 %309  ;;  %v456_v16 = vor.u32 1.1754944e-38, %v455_v7  ;;  %vm454_vm9 = vcmp.eq.f32.partialorder %v453_v9, 8.507059e+37 }
 0x3d6   :  { %v315_v61 = vsel %vm239_vm2, %v310_v59, 0  ;;  %v308_v0 = vpack.c.bf16 %v306_v60, %v306_v60  ;;  %v307_v13 = vadd.f32 %v306_v60, %v1268_v17  ;;  %v530_v23 = vor.u32 1.1754944e-38, %v529_v6 }
 0x3d7   :  { %324 = vmatpush.bf16.msrb.mxu0 %v315_v61 }
 0x3d8   :  { %v383_v22 = vadd.f32 %v1331_v33, %v307_v13  ;;  %v531_v25 = vsel %vm528_vm10, %v530_v23, %v526_v20  ;;  %vm410_vm10 = vcmask 195712  }
 0x3d9   :  { %v971_v1 = vpop.eup %970  ;;  %v1356_v29 = vmul.f32 %v1294_v48, %v531_v25 }
 0x3da   :  { %v445_v2 = vmul.f32 %v971_v1, %v443_v55  ;;  %895 = vmatmul.msk.bf16.vlgmr.msrb.gmra.mxu0 %vm185_vm1, %v308_v0  ;;  %vm450_vm3 = vweird.f32 %v971_v1 }
 0x3db   :  { %476 = vmatpush.bf16.msra.mxu0 %v467_v63  ;;  %vm451_vm7 = vmor %vm449_vm5, %vm450_vm3  ;;  %v534_v39 = vpack.c.bf16 %v1356_v29, %v1356_v29 }
 0x3dc   :  { %v446_v47 = vsub.f32 1.0, %v445_v2 }
 0x3de   :  { %v447_v8 = vmul.f32 %v971_v1, %v446_v47 }
 0x3e0   :  { %v448_v12 = vadd.f32 %v971_v1, %v447_v8 }
 0x3e2   :  { %v452_v18 = vsel %vm451_vm7, %v971_v1, %v448_v12  ;;  %v594_v19 = vpop.xlane.xlu2 %593 }
 0x3e3   :  { %v457_v21 = vsel %vm454_vm9, %v456_v16, %v452_v18  ;;  %972 = vrcp.f32 %v594_v19  ;;  %v606_v37 = vand.u32 2147483648, %v594_v19  ;;  %v604_v38 = vand.u32 2147483647, %v594_v19 }
 0x3e4   :  { %v458_v24 = vmul.f32 %v1315_v10, %v457_v21  ;;  %vm600_vm12 = vweird.f32 %v594_v19  ;;  %vm334_vm9 = vcmask 130112  }
 0x3e5   :  { %v607_v42 = vor.u32 1.1754944e-38, %v606_v37  ;;  %vm605_vm14 = vcmp.eq.f32.partialorder %v604_v38, 8.507059e+37  ;;  %v922_v37 = vld [vmem:[#allocation9 + $0x8] sm:$0xff] }
 0x3e6   :  { %v459_v26 = vadd.f32 %v458_v24, %v383_v22  ;;  %v460_v17 = vpack.c.bf16 %v458_v24, %v458_v24  ;;  %823 = vmatpush.bf16.msra.mxu1 %v922_v37 }
 0x3e8   :  { %v488_v27 = vmul.f32 0.25, %v459_v26 }
 0x3e9   :  { %v973_v28 = vpop.eup %972 }
 0x3ea   :  { %v596_v30 = vmul.f32 %v973_v28, %v594_v19  ;;  %v539_v35 = vpop.permute.xlu1 %538  ;;  %v613_v34 = vpop.permute.xlu2 %612  ;;  %899 = vmatmul.msk.bf16.vlgmr.msra.gmra.mxu0 %vm185_vm1, %v460_v17  ;;  %489 = vst.msk [vmem:[#allocation12] sm:$0xff] %vm185_vm1, %v488_v27  ;;  %vm601_vm11 = vweird.f32 %v973_v28 }
 0x3eb   :  { %v544_v10 = vsel %vm239_vm2, %v539_v35, 0  ;;  %v618_v33 = vsel %vm239_vm2, %v613_v34, 0  ;;  %vm602_vm13 = vmor %vm600_vm12, %vm601_vm11 }
 0x3ec   :  { %v597_v36 = vsub.f32 1.0, %v596_v30  ;;  %553 = vmatpush.bf16.msra.mxu2 %v544_v10  ;;  %627 = vmatpush.bf16.msrb.mxu0 %v618_v33 }
 0x3ee   :  { %v598_v48 = vmul.f32 %v973_v28, %v597_v36 }
 0x3ef   :  { %901 = vmatmul.msk.bf16.vlgmr.msra.gmra.mxu2 %vm185_vm1, %v534_v39  ;;  %v921_v39 = vld [vmem:[#allocation9] sm:$0xff] }
 0x3f0   :  { %v599_v41 = vadd.f32 %v973_v28, %v598_v48  ;;  %824 = vmatpush.bf16.msra.mxu1 %v921_v39 }
 0x3f2   :  { %v603_v43 = vsel %vm602_vm13, %v973_v28, %v599_v41  ;;  %v688_v44 = vpop.permute.xlu2 %687 }
 0x3f3   :  { %v608_v45 = vsel %vm605_vm14, %v607_v42, %v603_v43  ;;  %v693_v46 = vsel %vm239_vm2, %v688_v44, 0  ;;  %v945_v44 = vld [vmem:[%s1408_s6] ss:$0 sm:$0xff] }
 0x3f4   :  { %v609_v49 = vmul.f32 %v1320_v15, %v608_v45  ;;  %702 = vmatpush.bf16.msrb.mxu2 %v693_v46 }
 0x3f6   :  { %v611_v50 = vpack.c.bf16 %v609_v49, %v609_v49  ;;  %v610_v12 = vadd.f32 %v609_v49, %v1356_v29 }
 0x3fa   :  { %v763_v51 = vpop.permute.xlu2 %762  ;;  %903 = vmatmul.msk.bf16.vlgmr.msrb.gmra.mxu0 %vm185_vm1, %v611_v50 }
 0x3fb   :  { %v768_v52 = vsel %vm239_vm2, %v763_v51, 0 }
 0x3fc   :  { %777 = vmatpush.bf16.msra.mxu0 %v768_v52 }
 0x400   :  { %v669_v32 = vpop.xlane.xlu0 %668 }
 0x401   :  { %974 = vrcp.f32 %v669_v32  ;;  %v681_v56 = vand.u32 2147483648, %v669_v32  ;;  %v679_v58 = vand.u32 2147483647, %v669_v32  ;;  %vm675_vm3 = vweird.f32 %v669_v32 }
 0x403   :  { %v682_v15 = vor.u32 1.1754944e-38, %v681_v56  ;;  %vm680_vm5 = vcmp.eq.f32.partialorder %v679_v58, 8.507059e+37 }
 0x407   :  { %v975_v53 = vpop.eup %974 }
 0x408   :  { %v671_v54 = vmul.f32 %v975_v53, %v669_v32  ;;  %vm676_vm15 = vweird.f32 %v975_v53 }
 0x409   :  { %vm677_vm4 = vmor %vm675_vm3, %vm676_vm15 }
 0x40a   :  { %v672_v55 = vsub.f32 1.0, %v671_v54 }
 0x40c   :  { %v673_v57 = vmul.f32 %v975_v53, %v672_v55 }
 0x40e   :  { %v674_v59 = vadd.f32 %v975_v53, %v673_v57 }
 0x410   :  { %v678_v60 = vsel %vm677_vm4, %v975_v53, %v674_v59 }
 0x411   :  { %v683_v61 = vsel %vm680_vm5, %v682_v15, %v678_v60 }
 0x412   :  { %v684_v62 = vmul.f32 %v1328_v31, %v683_v61  ;;  %v402_v63 = vpop.f32.mrf.mxu2 }
 0x413   :  { %407 = vrot.lane.b32.xlu2 %v402_v63, %s1148_s12 }
 0x414   :  { %v686_v0 = vpack.c.bf16 %v684_v62, %v684_v62  ;;  %v685_v18 = vadd.f32 %v684_v62, %v610_v12 }
 0x415   :  { %v744_v1 = vpop.xlane.xlu1 %743 }
 0x416   :  { %976 = vrcp.f32 %v744_v1  ;;  %905 = vmatmul.msk.bf16.vlgmr.msrb.gmra.mxu2 %vm185_vm1, %v686_v0  ;;  %v756_v8 = vand.u32 2147483648, %v744_v1  ;;  %v754_v11 = vand.u32 2147483647, %v744_v1  ;;  %vm750_vm6 = vweird.f32 %v744_v1 }
 0x418   :  { %v757_v31 = vor.u32 1.1754944e-38, %v756_v8  ;;  %vm755_vm8 = vcmp.eq.f32.partialorder %v754_v11, 8.507059e+37 }
 0x41a   :  { %v404_v2 = vpop.f32.mrf.mxu2 }
 0x41c   :  { %v977_v5 = vpop.eup %976 }
 0x41d   :  { %v746_v47 = vmul.f32 %v977_v5, %v744_v1  ;;  %vm751_vm2 = vweird.f32 %v977_v5 }
 0x41e   :  { %vm752_vm7 = vmor %vm750_vm6, %vm751_vm2 }
 0x41f   :  { %v747_v7 = vsub.f32 1.0, %v746_v47 }
 0x421   :  { %v748_v9 = vmul.f32 %v977_v5, %v747_v7 }
 0x423   :  { %v749_v6 = vadd.f32 %v977_v5, %v748_v9 }
 0x425   :  { %v753_v13 = vsel %vm752_vm7, %v977_v5, %v749_v6 }
 0x426   :  { %v758_v14 = vsel %vm755_vm8, %v757_v31, %v753_v13 }
 0x427   :  { %v759_v16 = vmul.f32 %v1344_v40, %v758_v14 }
 0x429   :  { %v761_v19 = vpack.c.bf16 %v759_v16, %v759_v16  ;;  %v760_v20 = vadd.f32 %v759_v16, %v685_v18 }
 0x42b   :  { %907 = vmatmul.msk.bf16.vlgmr.msra.gmra.mxu0 %vm185_vm1, %v761_v19  ;;  %v788_v21 = vmul.f32 0.25, %v760_v20 }
 0x42d   :  { %790 = vst.msk [vmem:[#allocation12 + $0x8] sm:$0xff] %vm185_vm1, %v788_v21 }
 0x42e   :  { %860 = dma.vmem_to_hbm [thread:$0]  %s853_s15, 256, %s855_s19, [#allocation13], %s1136_s17, %s1136_s17, %s1137_s18  }
 0x457   :  { %v326_v23 = vpop.f32.mrf.mxu0 }
 0x458   :  { %331 = vrot.lane.b32.xlu0 %v326_v23, %s1137_s18 }
 0x45f   :  { %v328_v24 = vpop.f32.mrf.mxu0 }
 0x467   :  { %v478_v22 = vpop.f32.mrf.mxu0 }
 0x468   :  { %483 = vrot.lane.b32.xlu0 %v478_v22, %s1149_s13 }
 0x46d   :  { %v408_v34 = vpop.permute.xlu2 %407 }
 0x46f   :  { %v480_v25 = vpop.f32.mrf.mxu0 }
 0x472   :  { %v555_v26 = vpop.f32.mrf.mxu2 }
 0x473   :  { %559 = vst.msk [vmem:[#allocation2 + $0x8] sm:$0xff] %vm185_vm1, %v555_v26  ;;  %vm486_vm1 = vcmask 261312  }
 0x477   :  { %v629_v40 = vpop.f32.mrf.mxu0 }
 0x478   :  { %634 = vrot.lane.b32.xlu2 %v629_v40, %s1137_s18 }
 0x47a   :  { %v557_v17 = vpop.f32.mrf.mxu2 }
 0x47f   :  { %v631_v27 = vpop.f32.mrf.mxu0 }
 0x499   :  { %v704_v28 = vpop.f32.mrf.mxu2 }
 0x49a   :  { %709 = vrot.lane.b32.xlu1 %v704_v28, %s1148_s12 }
 0x4a1   :  { %v706_v29 = vpop.f32.mrf.mxu2 }
 0x4a8   :  { %v779_v30 = vpop.f32.mrf.mxu0 }
 0x4a9   :  { %784 = vrot.lane.b32.xlu2 %v779_v30, %s1149_s13 }
 0x4b0   :  { %v781_v35 = vpop.f32.mrf.mxu0 }
 0x4ca   :  { %v332_v10 = vpop.permute.xlu0 %331 }
 0x4cb   :  { %335 = vst.msk [vmem:[#allocation2] sm:$0xff] %vm334_vm9, %v332_v10 }
 0x4cc   :  { %411 = vst.msk [vmem:[#allocation2] sm:$0xff] %vm410_vm10, %v408_v34 }
 0x4d2   :  { %v635_v33 = vpop.permute.xlu2 %634 }
 0x4d3   :  { %637 = vst.msk [vmem:[#allocation2 + $0x8] sm:$0xff] %vm334_vm9, %v635_v33 }
 0x4da   :  { %v484_v36 = vpop.permute.xlu0 %483 }
 0x4db   :  { %487 = vst.msk [vmem:[#allocation2] sm:$0xff] %vm486_vm1, %v484_v36 }
 0x4e2   :  { %v791_v41 = vld [vmem:[#allocation2] sm:$0xff] }
 0x503   :  { %v785_v38 = vpop.permute.xlu2 %784 }
 0x50c   :  { %v710_v48 = vpop.permute.xlu1 %709 }
 0x50d   :  { %712 = vst.msk [vmem:[#allocation2 + $0x8] sm:$0xff] %vm410_vm10, %v710_v48 }
 0x50e   :  { %787 = vst.msk [vmem:[#allocation2 + $0x8] sm:$0xff] %vm486_vm1, %v785_v38 }
 0x515   :  { %v792_v42 = vld [vmem:[#allocation2 + $0x8] sm:$0xff] }
 0x516   :  { %v793_v43 = vpack.c.bf16 %v792_v42, %v791_v41 }
 0x518   :  { %916 = vmatmul.msk.bf16.vlgmr.msra.gmra.mxu1 %vm123_vm0, %v793_v43 }
 0x595   :  { %v826_v45 = vpop.f32.mrf.mxu1 }
 0x596   :  { %v827_v46 = vadd.f32 %v945_v44, %v826_v45 }
 0x598   :  { %v831_v49 = vadd.f32 %v827_v46, %v1212_v3 }
 0x59a   :  { %833 = vst.msk [vmem:[#allocation11] sm:$0xff] %vm123_vm0, %v831_v49 }
 0x59d   :  { %v828_v50 = vpop.f32.mrf.mxu1 }
 0x59e   :  { %v829_v51 = vadd.f32 %v945_v44, %v828_v50 }
 0x5a0   :  { %v832_v52 = vadd.f32 %v829_v51, %v1214_v4 }
 0x5a2   :  { %834 = vst.msk [vmem:[#allocation11 + $0x8] sm:$0xff] %vm123_vm0, %v832_v52 }
 0x5a3   :  { %847 = dma.vmem_to_hbm [thread:$0]  %s840_s22, 256, %s842_s24, [#allocation5], %s1136_s17, %s1136_s17, %s1137_s18  }
 0x5a4   :  { %1128 = dma.done.wait [#allocation5], 256  }
 0x5a5   :  { %1129 = vsyncadd [#allocation5], 4294967040 }
 0x5a6   :  { %1130 = dma.done.wait [#allocation13], 256  }
 0x5a7   :  { %1131 = vsyncadd [#allocation13], 4294967040 }
 0x5a8   :  { %869 = vsyncpa [#allocation4], 1 }
 0x5a9   :  { %870 = vsyncpa [#allocation7], 1 }
 0x5aa   :  { %871 = vsyncpa [#allocation10], 1 }
 0x5ab   :  { %872 = vsyncpa [#allocation5], 1 }
 0x5ac   :  { %873 = vsyncpa [#allocation13], 1 }

</bundles_post_ra>
